<compile_context>
chip_gen: v6e
topology: v6e:2x2x1
jax: 0.10.0
libtpu: 0.0.40
codegen_flags: <defaults>
</compile_context>

<pallas_src>
import functools
import math

import jax
import jax.numpy as jnp
from jax.experimental import pallas as pl
from jax.experimental.pallas import tpu as pltpu

# ---- small, module-consistent config ------------------------------------
TS_FEATURES = 4
LR_FEATURES = 4
HIDDEN = 32           # nn.LSTM hidden_size
BATCH = 2
SEQ_LEN = 8           # input sequence length
OUT_SEQ = 3           # window_config.output_sequence_length


def _autoreg_kernel(ts_ref, lr_ref,
                    enc_wts_ref, enc_wlr_ref, enc_whh_ref, enc_b_ref,
                    dec_wih_ref, dec_b_ref,
                    mlp_w1_ref, mlp_b1_ref, mlp_w2_ref, mlp_b2_ref,
                    out_ref, gx_buf,
                    *, seq_len, out_seq, hidden):
    f32 = jnp.float32
    H, T, S = hidden, seq_len, out_seq
    B = ts_ref.shape[0]                            # per-block batch
    nts = ts_ref.shape[-1]
    nlr = lr_ref.shape[-1]

    # ---- encoder input projection, hoisted off the serial recurrence -------
    # x @ W_ih == ts @ W_ts + lr @ W_lr (W_ih rows pre-split -> no concat); the
    # bias is added once.  Fusing the two projections into one matmul (review
    # item) needs an unaligned 4+4 lane concat for ~zero win off the critical
    # path, so it is intentionally not done.
    ts2 = ts_ref[...].reshape(B * T, nts)          # row = b*T + t (layout no-op)
    lr_all = lr_ref[...]                           # [B, T, LR]
    lr2 = lr_all.reshape(B * T, nlr)
    gx = (jnp.dot(ts2, enc_wts_ref[...], preferred_element_type=f32)
          + jnp.dot(lr2, enc_wlr_ref[...], preferred_element_type=f32)
          + enc_b_ref[...])                        # [B*T, 4H]
    gx3 = gx.reshape(B, T, 4 * H)

    # Stage gx t-major in VMEM so each serial step reads one aligned [B, 4H]
    # tile instead of gathering sublane t out of the b-major register value.
    for b in range(B):                             # B tiny; once, off the chain
        gx_buf[:, b, :] = gx3[b]

    enc_whh = enc_whh_ref[...]

    # ---- encoder recurrence: only h @ W_hh remains on the serial path ------
    # TODO(synk): keeping enc_whh resident in the MXU via
    # pltpu.matmul_push_rhs/matmul_acc_lhs/matmul_pop (review item 1) is not
    # used: accumulator reset semantics for a per-step pop at these tiny
    # [B,32]x[32,128] shapes are unverified, so jnp.dot is the safe path.
    h = jnp.zeros((B, H), f32)
    c = jnp.zeros((B, H), f32)
    for t in range(T):                             # static unroll (T small)
        gates = gx_buf[t]                          # aligned [B, 4H] load
        if t > 0:                                  # h == 0 at t == 0
            gates = gates + jnp.dot(h, enc_whh, preferred_element_type=f32)
        sig = jax.nn.sigmoid(gates)                # one EUP pass covers i, f, o
        th = jnp.tanh(gates)                       # one EUP pass covers g
        i = sig[:, 0 * H:1 * H]
        g = th[:, 2 * H:3 * H]
        o = sig[:, 3 * H:4 * H]
        if t > 0:
            c = sig[:, 1 * H:2 * H] * c + i * g
        else:                                      # c == 0 at t == 0
            c = i * g
        h = o * jnp.tanh(c)                        # after loop == enc[:, -1, :]

    # ---- decoder + MLP head + lr accumulation, fully in registers ----------
    # self.dec(enc) is stateless (h = c = 0 every call), so h @ W_hh and f*c
    # are exactly zero -> removed.  The MLP / lr add / output store for step s
    # do not feed the next decoder step, so the scheduler overlaps them with
    # it; keeping them per step removes any dh staging through VMEM.
    dec_wih = dec_wih_ref[...]
    dec_b = jnp.broadcast_to(dec_b_ref[...], (B, 4 * H))     # hoisted broadcasts
    mlp_w1 = mlp_w1_ref[...]
    mlp_b1 = jnp.broadcast_to(mlp_b1_ref[...], (B, H))
    mlp_w2 = mlp_w2_ref[...]
    mlp_b2 = jnp.broadcast_to(mlp_b2_ref[...], (B, nlr))

    # TODO(synk): simple.mlp definition not given; assumed Linear->ReLU->Linear.
    lr_cur = lr_all[:, T - 1, :]                   # lr[:, -1, :], sliced in-kernel
    dec_in = h
    for s in range(S):                             # static unroll (S small)
        gates = jnp.dot(dec_in, dec_wih, preferred_element_type=f32) + dec_b
        sig = jax.nn.sigmoid(gates)
        th = jnp.tanh(gates)
        dh = (sig[:, 3 * H:4 * H]
              * jnp.tanh(sig[:, 0 * H:1 * H] * th[:, 2 * H:3 * H]))  # c0 == 0
        hid = jnp.maximum(
            jnp.dot(dh, mlp_w1, preferred_element_type=f32) + mlp_b1, 0.0)
        delta = jnp.dot(hid, mlp_w2, preferred_element_type=f32) + mlp_b2
        lr_cur = lr_cur + delta
        out_ref[:, s, :] = lr_cur                  # final [B, S, LR] layout
        dec_in = dh                                # next input (enc, _ = dec(enc))


def autoreg_lstm_lr(ts, lr, params, *, out_seq=OUT_SEQ, hidden=HIDDEN,
                    block_b=None):
    """ts: [B, T, ts_features], lr: [B, T, lr_features] -> [B, out_seq, lr_features].

    The grid runs over batch blocks ('parallel', so v7x shards it across its two
    TensorCores); weights use constant-index BlockSpecs so they are DMA'd once
    and stay VMEM-resident across grid steps.  For the tiny demo batch this is
    grid=(1,).  No wrapper-side concat / transpose / slice.
    """
    B, T, _ = ts.shape
    nlr = lr.shape[-1]
    if block_b is None:
        block_b = 8 if (B > 8 and B % 8 == 0) else B
    assert B % block_b == 0, (B, block_b)
    grid = (B // block_b,)

    kernel = functools.partial(_autoreg_kernel, seq_len=T, out_seq=out_seq,
                               hidden=hidden)

    def batched(shape):
        nd = len(shape)
        return pl.BlockSpec((block_b,) + tuple(shape[1:]),
                            lambda i: (i,) + (0,) * (nd - 1))

    def resident(arr):
        nd = arr.ndim
        return pl.BlockSpec(tuple(arr.shape), lambda i: (0,) * nd)

    weights = (params["enc_wts"], params["enc_wlr"], params["enc_whh"],
               params["enc_b"], params["dec_wih"], params["dec_b"],
               params["mlp_w1"], params["mlp_b1"], params["mlp_w2"],
               params["mlp_b2"])

    return pl.pallas_call(
        kernel,
        out_shape=jax.ShapeDtypeStruct((B, out_seq, nlr), jnp.float32),
        grid=grid,
        in_specs=[batched(ts.shape), batched(lr.shape)]
                 + [resident(w) for w in weights],
        out_specs=batched((B, out_seq, nlr)),
        scratch_shapes=[pltpu.VMEM((T, block_b, 4 * hidden), jnp.float32)],
        compiler_params=pltpu.CompilerParams(
            dimension_semantics=("parallel",)),
    )(ts, lr, *weights)


def init_params(key, hidden=HIDDEN, ts_features=TS_FEATURES,
                lr_features=LR_FEATURES):
    ks = jax.random.split(key, 10)
    bound = 1.0 / math.sqrt(hidden)
    u = lambda k, shape: jax.random.uniform(k, shape, jnp.float32, -bound, bound)
    return dict(
        enc_wts=u(ks[0], (ts_features, 4 * hidden)),   # enc W_ih rows for ts
        enc_wlr=u(ks[1], (lr_features, 4 * hidden)),   # enc W_ih rows for lr
        enc_whh=u(ks[2], (hidden, 4 * hidden)),
        enc_b=u(ks[3], (1, 4 * hidden)),               # b_ih + b_hh folded
        dec_wih=u(ks[4], (hidden, 4 * hidden)),
        dec_b=u(ks[5], (1, 4 * hidden)),
        mlp_w1=u(ks[6], (hidden, hidden)),
        mlp_b1=u(ks[7], (1, hidden)),
        mlp_w2=u(ks[8], (hidden, lr_features)),
        mlp_b2=u(ks[9], (1, lr_features)),
    )


# ---- pure-JAX reference mirroring the PyTorch forward ----------------------
def _lstm_cell_ref(x, h, c, w_ih, w_hh, b, hidden):
    gates = x @ w_ih + h @ w_hh + b
    i = jax.nn.sigmoid(gates[:, 0 * hidden:1 * hidden])
    f = jax.nn.sigmoid(gates[:, 1 * hidden:2 * hidden])
    g = jnp.tanh(gates[:, 2 * hidden:3 * hidden])
    o = jax.nn.sigmoid(gates[:, 3 * hidden:4 * hidden])
    c_new = f * c + i * g
    h_new = o * jnp.tanh(c_new)
    return h_new, c_new


def _reference(ts, lr, params, out_seq=OUT_SEQ, hidden=HIDDEN):
    enc_wih = jnp.concatenate([params["enc_wts"], params["enc_wlr"]], axis=0)
    x = jnp.concatenate([ts, lr], axis=2)                 # torch.cat(x, dim=2)
    B, T, _ = x.shape
    h = jnp.zeros((B, hidden), jnp.float32)
    c = jnp.zeros((B, hidden), jnp.float32)
    for t in range(T):
        h, c = _lstm_cell_ref(x[:, t, :], h, c, enc_wih, params["enc_whh"],
                              params["enc_b"], hidden)
    lr_cur = lr[:, -1, :]
    dec_in = h
    z = jnp.zeros((B, hidden), jnp.float32)
    zwhh = jnp.zeros((hidden, 4 * hidden), jnp.float32)   # dec called with h=c=0
    outs = []
    for _ in range(out_seq):
        dh, _ = _lstm_cell_ref(dec_in, z, z, params["dec_wih"], zwhh,
                               params["dec_b"], hidden)
        hid = jnp.maximum(dh @ params["mlp_w1"] + params["mlp_b1"], 0.0)
        delta = hid @ params["mlp_w2"] + params["mlp_b2"]
        lr_cur = lr_cur + delta
        outs.append(lr_cur)
        dec_in = dh
    return jnp.stack(outs, axis=1)


if __name__ == "__main__":
    key = jax.random.PRNGKey(0)
    k_ts, k_lr, k_p = jax.random.split(key, 3)
    ts = jax.random.normal(k_ts, (BATCH, SEQ_LEN, TS_FEATURES), jnp.float32)
    lr = jax.random.normal(k_lr, (BATCH, SEQ_LEN, LR_FEATURES), jnp.float32)
    params = init_params(k_p)

    out = jax.block_until_ready(autoreg_lstm_lr(ts, lr, params))
    assert out.shape == (BATCH, OUT_SEQ, LR_FEATURES), out.shape

    ref = _reference(ts, lr, params)
    assert jnp.allclose(out, ref, atol=1e-4, rtol=1e-4), (out, ref)

    print("KERNEL_OK")
</pallas_src>

<mosaic_0001>
module attributes {stable_mosaic.version = 11 : i64} {
  func.func @_autoreg_kernel(%arg0: i32, %arg1: memref<2x8x4xf32, #tpu.memory_space<vmem>>, %arg2: memref<2x8x4xf32, #tpu.memory_space<vmem>>, %arg3: memref<4x128xf32, #tpu.memory_space<vmem>>, %arg4: memref<4x128xf32, #tpu.memory_space<vmem>>, %arg5: memref<32x128xf32, #tpu.memory_space<vmem>>, %arg6: memref<1x128xf32, #tpu.memory_space<vmem>>, %arg7: memref<32x128xf32, #tpu.memory_space<vmem>>, %arg8: memref<1x128xf32, #tpu.memory_space<vmem>>, %arg9: memref<32x32xf32, #tpu.memory_space<vmem>>, %arg10: memref<1x32xf32, #tpu.memory_space<vmem>>, %arg11: memref<32x4xf32, #tpu.memory_space<vmem>>, %arg12: memref<1x4xf32, #tpu.memory_space<vmem>>, %arg13: memref<2x3x4xf32, #tpu.memory_space<vmem>>, %arg14: memref<8x2x128xf32, #tpu.memory_space<vmem>>) attributes {dimension_semantics = [#tpu.dimension_semantics<parallel>], iteration_bounds = array<i64: 1>, scalar_prefetch = 0 : i64, scratch_operands = 1 : i64, tpu.core_type = #tpu.core_type<tc>, window_params = [{transform_indices = @transform_0, window_bounds = array<i64: 2, 8, 4>}, {transform_indices = @transform_1, window_bounds = array<i64: 2, 8, 4>}, {pipeline_mode = #tpu.pipeline_mode<synchronous>, transform_indices = @transform_2, window_bounds = array<i64: 4, 128>}, {pipeline_mode = #tpu.pipeline_mode<synchronous>, transform_indices = @transform_3, window_bounds = array<i64: 4, 128>}, {pipeline_mode = #tpu.pipeline_mode<synchronous>, transform_indices = @transform_4, window_bounds = array<i64: 32, 128>}, {pipeline_mode = #tpu.pipeline_mode<synchronous>, transform_indices = @transform_5, window_bounds = array<i64: 1, 128>}, {pipeline_mode = #tpu.pipeline_mode<synchronous>, transform_indices = @transform_6, window_bounds = array<i64: 32, 128>}, {pipeline_mode = #tpu.pipeline_mode<synchronous>, transform_indices = @transform_7, window_bounds = array<i64: 1, 128>}, {pipeline_mode = #tpu.pipeline_mode<synchronous>, transform_indices = @transform_8, window_bounds = array<i64: 32, 32>}, {pipeline_mode = #tpu.pipeline_mode<synchronous>, transform_indices = @transform_9, window_bounds = array<i64: 1, 32>}, {pipeline_mode = #tpu.pipeline_mode<synchronous>, transform_indices = @transform_10, window_bounds = array<i64: 32, 4>}, {pipeline_mode = #tpu.pipeline_mode<synchronous>, transform_indices = @transform_11, window_bounds = array<i64: 1, 4>}, {transform_indices = @transform_12, window_bounds = array<i64: 2, 3, 4>}]} {
    %c0 = arith.constant 0 : index
    %c0_0 = arith.constant 0 : index
    %c0_1 = arith.constant 0 : index
    %0 = vector.load %arg1[%c0, %c0_0, %c0_1] : memref<2x8x4xf32, #tpu.memory_space<vmem>>, vector<2x8x4xf32>
    %1 = vector.shape_cast %0 : vector<2x8x4xf32> to vector<16x4xf32>
    %c0_2 = arith.constant 0 : index
    %c0_3 = arith.constant 0 : index
    %c0_4 = arith.constant 0 : index
    %2 = vector.load %arg2[%c0_2, %c0_3, %c0_4] : memref<2x8x4xf32, #tpu.memory_space<vmem>>, vector<2x8x4xf32>
    %3 = vector.shape_cast %2 : vector<2x8x4xf32> to vector<16x4xf32>
    %c0_5 = arith.constant 0 : index
    %c0_6 = arith.constant 0 : index
    %4 = vector.load %arg3[%c0_5, %c0_6] : memref<4x128xf32, #tpu.memory_space<vmem>>, vector<4x128xf32>
    %cst = arith.constant dense<0.000000e+00> : vector<16x128xf32>
    %5 = tpu.matmul %1, %4, %cst {dimension_numbers = #tpu.dot_dimension_numbers<[1], [0], [0], [1], [0, 0, 1, 1], [], []>} : vector<16x4xf32>, vector<4x128xf32>, vector<16x128xf32> -> vector<16x128xf32>
    %c0_7 = arith.constant 0 : index
    %c0_8 = arith.constant 0 : index
    %6 = vector.load %arg4[%c0_7, %c0_8] : memref<4x128xf32, #tpu.memory_space<vmem>>, vector<4x128xf32>
    %cst_9 = arith.constant dense<0.000000e+00> : vector<16x128xf32>
    %7 = tpu.matmul %3, %6, %cst_9 {dimension_numbers = #tpu.dot_dimension_numbers<[1], [0], [0], [1], [0, 0, 1, 1], [], []>} : vector<16x4xf32>, vector<4x128xf32>, vector<16x128xf32> -> vector<16x128xf32>
    %8 = arith.addf %5, %7 : vector<16x128xf32>
    %c0_10 = arith.constant 0 : index
    %c0_11 = arith.constant 0 : index
    %9 = vector.load %arg6[%c0_10, %c0_11] : memref<1x128xf32, #tpu.memory_space<vmem>>, vector<1x128xf32>
    %10 = vector.broadcast %9 : vector<1x128xf32> to vector<16x128xf32>
    %11 = arith.addf %8, %10 : vector<16x128xf32>
    %12 = vector.shape_cast %11 : vector<16x128xf32> to vector<2x8x128xf32>
    %13 = vector.extract_strided_slice %12 {offsets = [0, 0, 0], sizes = [1, 8, 128], strides = [1, 1, 1]} : vector<2x8x128xf32> to vector<1x8x128xf32>
    %14 = vector.shape_cast %13 : vector<1x8x128xf32> to vector<8x128xf32>
    %c0_12 = arith.constant 0 : index
    %c0_13 = arith.constant 0 : index
    %c0_14 = arith.constant 0 : index
    %15 = vector.load %arg14[%c0_12, %c0_13, %c0_14] : memref<8x2x128xf32, #tpu.memory_space<vmem>>, vector<8x1x128xf32>
    %16 = vector.shape_cast %15 : vector<8x1x128xf32> to vector<8x128xf32>
    %17 = vector.shape_cast %14 : vector<8x128xf32> to vector<8x1x128xf32>
    tpu.vector_store %arg14[%c0_12, %c0_13, %c0_14], %17 {strides = array<i32>} : memref<8x2x128xf32, #tpu.memory_space<vmem>>, vector<8x1x128xf32>,
    %18 = vector.extract_strided_slice %12 {offsets = [1, 0, 0], sizes = [1, 8, 128], strides = [1, 1, 1]} : vector<2x8x128xf32> to vector<1x8x128xf32>
    %19 = vector.shape_cast %18 : vector<1x8x128xf32> to vector<8x128xf32>
    %c0_15 = arith.constant 0 : index
    %c1 = arith.constant 1 : index
    %c0_16 = arith.constant 0 : index
    %20 = vector.load %arg14[%c0_15, %c1, %c0_16] : memref<8x2x128xf32, #tpu.memory_space<vmem>>, vector<8x1x128xf32>
    %21 = vector.shape_cast %20 : vector<8x1x128xf32> to vector<8x128xf32>
    %22 = vector.shape_cast %19 : vector<8x128xf32> to vector<8x1x128xf32>
    tpu.vector_store %arg14[%c0_15, %c1, %c0_16], %22 {strides = array<i32>} : memref<8x2x128xf32, #tpu.memory_space<vmem>>, vector<8x1x128xf32>,
    %c0_17 = arith.constant 0 : index
    %c0_18 = arith.constant 0 : index
    %23 = vector.load %arg5[%c0_17, %c0_18] : memref<32x128xf32, #tpu.memory_space<vmem>>, vector<32x128xf32>
    %c0_19 = arith.constant 0 : index
    %c0_20 = arith.constant 0 : index
    %c0_21 = arith.constant 0 : index
    %24 = vector.load %arg14[%c0_19, %c0_20, %c0_21] : memref<8x2x128xf32, #tpu.memory_space<vmem>>, vector<1x2x128xf32>
    %25 = vector.shape_cast %24 : vector<1x2x128xf32> to vector<2x128xf32>
    %26 = arith.negf %25 : vector<2x128xf32>
    %27 = math.exp %26 : vector<2x128xf32>
    %cst_22 = arith.constant 1.000000e+00 : f32
    %28 = vector.broadcast %cst_22 : f32 to vector<2x128xf32>
    %29 = arith.addf %28, %27 : vector<2x128xf32>
    %30 = arith.divf %28, %29 : vector<2x128xf32>
    %31 = math.tanh %25 : vector<2x128xf32>
    %32 = vector.extract_strided_slice %30 {offsets = [0, 0], sizes = [2, 32], strides = [1, 1]} : vector<2x128xf32> to vector<2x32xf32>
    %33 = vector.extract_strided_slice %31 {offsets = [0, 64], sizes = [2, 32], strides = [1, 1]} : vector<2x128xf32> to vector<2x32xf32>
    %34 = vector.extract_strided_slice %30 {offsets = [0, 96], sizes = [2, 32], strides = [1, 1]} : vector<2x128xf32> to vector<2x32xf32>
    %35 = arith.mulf %32, %33 : vector<2x32xf32>
    %36 = math.tanh %35 : vector<2x32xf32>
    %37 = arith.mulf %34, %36 : vector<2x32xf32>
    %c1_23 = arith.constant 1 : index
    %c0_24 = arith.constant 0 : index
    %c0_25 = arith.constant 0 : index
    %38 = vector.load %arg14[%c1_23, %c0_24, %c0_25] : memref<8x2x128xf32, #tpu.memory_space<vmem>>, vector<1x2x128xf32>
    %39 = vector.shape_cast %38 : vector<1x2x128xf32> to vector<2x128xf32>
    %cst_26 = arith.constant dense<0.000000e+00> : vector<2x128xf32>
    %40 = tpu.matmul %37, %23, %cst_26 {dimension_numbers = #tpu.dot_dimension_numbers<[1], [0], [0], [1], [0, 0, 1, 1], [], []>} : vector<2x32xf32>, vector<32x128xf32>, vector<2x128xf32> -> vector<2x128xf32>
    %41 = arith.addf %39, %40 : vector<2x128xf32>
    %42 = arith.negf %41 : vector<2x128xf32>
    %43 = math.exp %42 : vector<2x128xf32>
    %cst_27 = arith.constant 1.000000e+00 : f32
    %44 = vector.broadcast %cst_27 : f32 to vector<2x128xf32>
    %45 = arith.addf %44, %43 : vector<2x128xf32>
    %46 = arith.divf %44, %45 : vector<2x128xf32>
    %47 = math.tanh %41 : vector<2x128xf32>
    %48 = vector.extract_strided_slice %46 {offsets = [0, 0], sizes = [2, 32], strides = [1, 1]} : vector<2x128xf32> to vector<2x32xf32>
    %49 = vector.extract_strided_slice %47 {offsets = [0, 64], sizes = [2, 32], strides = [1, 1]} : vector<2x128xf32> to vector<2x32xf32>
    %50 = vector.extract_strided_slice %46 {offsets = [0, 96], sizes = [2, 32], strides = [1, 1]} : vector<2x128xf32> to vector<2x32xf32>
    %51 = vector.extract_strided_slice %46 {offsets = [0, 32], sizes = [2, 32], strides = [1, 1]} : vector<2x128xf32> to vector<2x32xf32>
    %52 = arith.mulf %51, %35 : vector<2x32xf32>
    %53 = arith.mulf %48, %49 : vector<2x32xf32>
    %54 = arith.addf %52, %53 : vector<2x32xf32>
    %55 = math.tanh %54 : vector<2x32xf32>
    %56 = arith.mulf %50, %55 : vector<2x32xf32>
    %c2 = arith.constant 2 : index
    %c0_28 = arith.constant 0 : index
    %c0_29 = arith.constant 0 : index
    %57 = vector.load %arg14[%c2, %c0_28, %c0_29] : memref<8x2x128xf32, #tpu.memory_space<vmem>>, vector<1x2x128xf32>
    %58 = vector.shape_cast %57 : vector<1x2x128xf32> to vector<2x128xf32>
    %cst_30 = arith.constant dense<0.000000e+00> : vector<2x128xf32>
    %59 = tpu.matmul %56, %23, %cst_30 {dimension_numbers = #tpu.dot_dimension_numbers<[1], [0], [0], [1], [0, 0, 1, 1], [], []>} : vector<2x32xf32>, vector<32x128xf32>, vector<2x128xf32> -> vector<2x128xf32>
    %60 = arith.addf %58, %59 : vector<2x128xf32>
    %61 = arith.negf %60 : vector<2x128xf32>
    %62 = math.exp %61 : vector<2x128xf32>
    %cst_31 = arith.constant 1.000000e+00 : f32
    %63 = vector.broadcast %cst_31 : f32 to vector<2x128xf32>
    %64 = arith.addf %63, %62 : vector<2x128xf32>
    %65 = arith.divf %63, %64 : vector<2x128xf32>
    %66 = math.tanh %60 : vector<2x128xf32>
    %67 = vector.extract_strided_slice %65 {offsets = [0, 0], sizes = [2, 32], strides = [1, 1]} : vector<2x128xf32> to vector<2x32xf32>
    %68 = vector.extract_strided_slice %66 {offsets = [0, 64], sizes = [2, 32], strides = [1, 1]} : vector<2x128xf32> to vector<2x32xf32>
    %69 = vector.extract_strided_slice %65 {offsets = [0, 96], sizes = [2, 32], strides = [1, 1]} : vector<2x128xf32> to vector<2x32xf32>
    %70 = vector.extract_strided_slice %65 {offsets = [0, 32], sizes = [2, 32], strides = [1, 1]} : vector<2x128xf32> to vector<2x32xf32>
    %71 = arith.mulf %70, %54 : vector<2x32xf32>
    %72 = arith.mulf %67, %68 : vector<2x32xf32>
    %73 = arith.addf %71, %72 : vector<2x32xf32>
    %74 = math.tanh %73 : vector<2x32xf32>
    %75 = arith.mulf %69, %74 : vector<2x32xf32>
    %c3 = arith.constant 3 : index
    %c0_32 = arith.constant 0 : index
    %c0_33 = arith.constant 0 : index
    %76 = vector.load %arg14[%c3, %c0_32, %c0_33] : memref<8x2x128xf32, #tpu.memory_space<vmem>>, vector<1x2x128xf32>
    %77 = vector.shape_cast %76 : vector<1x2x128xf32> to vector<2x128xf32>
    %cst_34 = arith.constant dense<0.000000e+00> : vector<2x128xf32>
    %78 = tpu.matmul %75, %23, %cst_34 {dimension_numbers = #tpu.dot_dimension_numbers<[1], [0], [0], [1], [0, 0, 1, 1], [], []>} : vector<2x32xf32>, vector<32x128xf32>, vector<2x128xf32> -> vector<2x128xf32>
    %79 = arith.addf %77, %78 : vector<2x128xf32>
    %80 = arith.negf %79 : vector<2x128xf32>
    %81 = math.exp %80 : vector<2x128xf32>
    %cst_35 = arith.constant 1.000000e+00 : f32
    %82 = vector.broadcast %cst_35 : f32 to vector<2x128xf32>
    %83 = arith.addf %82, %81 : vector<2x128xf32>
    %84 = arith.divf %82, %83 : vector<2x128xf32>
    %85 = math.tanh %79 : vector<2x128xf32>
    %86 = vector.extract_strided_slice %84 {offsets = [0, 0], sizes = [2, 32], strides = [1, 1]} : vector<2x128xf32> to vector<2x32xf32>
    %87 = vector.extract_strided_slice %85 {offsets = [0, 64], sizes = [2, 32], strides = [1, 1]} : vector<2x128xf32> to vector<2x32xf32>
    %88 = vector.extract_strided_slice %84 {offsets = [0, 96], sizes = [2, 32], strides = [1, 1]} : vector<2x128xf32> to vector<2x32xf32>
    %89 = vector.extract_strided_slice %84 {offsets = [0, 32], sizes = [2, 32], strides = [1, 1]} : vector<2x128xf32> to vector<2x32xf32>
    %90 = arith.mulf %89, %73 : vector<2x32xf32>
    %91 = arith.mulf %86, %87 : vector<2x32xf32>
    %92 = arith.addf %90, %91 : vector<2x32xf32>
    %93 = math.tanh %92 : vector<2x32xf32>
    %94 = arith.mulf %88, %93 : vector<2x32xf32>
    %c4 = arith.constant 4 : index
    %c0_36 = arith.constant 0 : index
    %c0_37 = arith.constant 0 : index
    %95 = vector.load %arg14[%c4, %c0_36, %c0_37] : memref<8x2x128xf32, #tpu.memory_space<vmem>>, vector<1x2x128xf32>
    %96 = vector.shape_cast %95 : vector<1x2x128xf32> to vector<2x128xf32>
    %cst_38 = arith.constant dense<0.000000e+00> : vector<2x128xf32>
    %97 = tpu.matmul %94, %23, %cst_38 {dimension_numbers = #tpu.dot_dimension_numbers<[1], [0], [0], [1], [0, 0, 1, 1], [], []>} : vector<2x32xf32>, vector<32x128xf32>, vector<2x128xf32> -> vector<2x128xf32>
    %98 = arith.addf %96, %97 : vector<2x128xf32>
    %99 = arith.negf %98 : vector<2x128xf32>
    %100 = math.exp %99 : vector<2x128xf32>
    %cst_39 = arith.constant 1.000000e+00 : f32
    %101 = vector.broadcast %cst_39 : f32 to vector<2x128xf32>
    %102 = arith.addf %101, %100 : vector<2x128xf32>
    %103 = arith.divf %101, %102 : vector<2x128xf32>
    %104 = math.tanh %98 : vector<2x128xf32>
    %105 = vector.extract_strided_slice %103 {offsets = [0, 0], sizes = [2, 32], strides = [1, 1]} : vector<2x128xf32> to vector<2x32xf32>
    %106 = vector.extract_strided_slice %104 {offsets = [0, 64], sizes = [2, 32], strides = [1, 1]} : vector<2x128xf32> to vector<2x32xf32>
    %107 = vector.extract_strided_slice %103 {offsets = [0, 96], sizes = [2, 32], strides = [1, 1]} : vector<2x128xf32> to vector<2x32xf32>
    %108 = vector.extract_strided_slice %103 {offsets = [0, 32], sizes = [2, 32], strides = [1, 1]} : vector<2x128xf32> to vector<2x32xf32>
    %109 = arith.mulf %108, %92 : vector<2x32xf32>
    %110 = arith.mulf %105, %106 : vector<2x32xf32>
    %111 = arith.addf %109, %110 : vector<2x32xf32>
    %112 = math.tanh %111 : vector<2x32xf32>
    %113 = arith.mulf %107, %112 : vector<2x32xf32>
    %c5 = arith.constant 5 : index
    %c0_40 = arith.constant 0 : index
    %c0_41 = arith.constant 0 : index
    %114 = vector.load %arg14[%c5, %c0_40, %c0_41] : memref<8x2x128xf32, #tpu.memory_space<vmem>>, vector<1x2x128xf32>
    %115 = vector.shape_cast %114 : vector<1x2x128xf32> to vector<2x128xf32>
    %cst_42 = arith.constant dense<0.000000e+00> : vector<2x128xf32>
    %116 = tpu.matmul %113, %23, %cst_42 {dimension_numbers = #tpu.dot_dimension_numbers<[1], [0], [0], [1], [0, 0, 1, 1], [], []>} : vector<2x32xf32>, vector<32x128xf32>, vector<2x128xf32> -> vector<2x128xf32>
    %117 = arith.addf %115, %116 : vector<2x128xf32>
    %118 = arith.negf %117 : vector<2x128xf32>
    %119 = math.exp %118 : vector<2x128xf32>
    %cst_43 = arith.constant 1.000000e+00 : f32
    %120 = vector.broadcast %cst_43 : f32 to vector<2x128xf32>
    %121 = arith.addf %120, %119 : vector<2x128xf32>
    %122 = arith.divf %120, %121 : vector<2x128xf32>
    %123 = math.tanh %117 : vector<2x128xf32>
    %124 = vector.extract_strided_slice %122 {offsets = [0, 0], sizes = [2, 32], strides = [1, 1]} : vector<2x128xf32> to vector<2x32xf32>
    %125 = vector.extract_strided_slice %123 {offsets = [0, 64], sizes = [2, 32], strides = [1, 1]} : vector<2x128xf32> to vector<2x32xf32>
    %126 = vector.extract_strided_slice %122 {offsets = [0, 96], sizes = [2, 32], strides = [1, 1]} : vector<2x128xf32> to vector<2x32xf32>
    %127 = vector.extract_strided_slice %122 {offsets = [0, 32], sizes = [2, 32], strides = [1, 1]} : vector<2x128xf32> to vector<2x32xf32>
    %128 = arith.mulf %127, %111 : vector<2x32xf32>
    %129 = arith.mulf %124, %125 : vector<2x32xf32>
    %130 = arith.addf %128, %129 : vector<2x32xf32>
    %131 = math.tanh %130 : vector<2x32xf32>
    %132 = arith.mulf %126, %131 : vector<2x32xf32>
    %c6 = arith.constant 6 : index
    %c0_44 = arith.constant 0 : index
    %c0_45 = arith.constant 0 : index
    %133 = vector.load %arg14[%c6, %c0_44, %c0_45] : memref<8x2x128xf32, #tpu.memory_space<vmem>>, vector<1x2x128xf32>
    %134 = vector.shape_cast %133 : vector<1x2x128xf32> to vector<2x128xf32>
    %cst_46 = arith.constant dense<0.000000e+00> : vector<2x128xf32>
    %135 = tpu.matmul %132, %23, %cst_46 {dimension_numbers = #tpu.dot_dimension_numbers<[1], [0], [0], [1], [0, 0, 1, 1], [], []>} : vector<2x32xf32>, vector<32x128xf32>, vector<2x128xf32> -> vector<2x128xf32>
    %136 = arith.addf %134, %135 : vector<2x128xf32>
    %137 = arith.negf %136 : vector<2x128xf32>
    %138 = math.exp %137 : vector<2x128xf32>
    %cst_47 = arith.constant 1.000000e+00 : f32
    %139 = vector.broadcast %cst_47 : f32 to vector<2x128xf32>
    %140 = arith.addf %139, %138 : vector<2x128xf32>
    %141 = arith.divf %139, %140 : vector<2x128xf32>
    %142 = math.tanh %136 : vector<2x128xf32>
    %143 = vector.extract_strided_slice %141 {offsets = [0, 0], sizes = [2, 32], strides = [1, 1]} : vector<2x128xf32> to vector<2x32xf32>
    %144 = vector.extract_strided_slice %142 {offsets = [0, 64], sizes = [2, 32], strides = [1, 1]} : vector<2x128xf32> to vector<2x32xf32>
    %145 = vector.extract_strided_slice %141 {offsets = [0, 96], sizes = [2, 32], strides = [1, 1]} : vector<2x128xf32> to vector<2x32xf32>
    %146 = vector.extract_strided_slice %141 {offsets = [0, 32], sizes = [2, 32], strides = [1, 1]} : vector<2x128xf32> to vector<2x32xf32>
    %147 = arith.mulf %146, %130 : vector<2x32xf32>
    %148 = arith.mulf %143, %144 : vector<2x32xf32>
    %149 = arith.addf %147, %148 : vector<2x32xf32>
    %150 = math.tanh %149 : vector<2x32xf32>
    %151 = arith.mulf %145, %150 : vector<2x32xf32>
    %c7 = arith.constant 7 : index
    %c0_48 = arith.constant 0 : index
    %c0_49 = arith.constant 0 : index
    %152 = vector.load %arg14[%c7, %c0_48, %c0_49] : memref<8x2x128xf32, #tpu.memory_space<vmem>>, vector<1x2x128xf32>
    %153 = vector.shape_cast %152 : vector<1x2x128xf32> to vector<2x128xf32>
    %cst_50 = arith.constant dense<0.000000e+00> : vector<2x128xf32>
    %154 = tpu.matmul %151, %23, %cst_50 {dimension_numbers = #tpu.dot_dimension_numbers<[1], [0], [0], [1], [0, 0, 1, 1], [], []>} : vector<2x32xf32>, vector<32x128xf32>, vector<2x128xf32> -> vector<2x128xf32>
    %155 = arith.addf %153, %154 : vector<2x128xf32>
    %156 = arith.negf %155 : vector<2x128xf32>
    %157 = math.exp %156 : vector<2x128xf32>
    %cst_51 = arith.constant 1.000000e+00 : f32
    %158 = vector.broadcast %cst_51 : f32 to vector<2x128xf32>
    %159 = arith.addf %158, %157 : vector<2x128xf32>
    %160 = arith.divf %158, %159 : vector<2x128xf32>
    %161 = math.tanh %155 : vector<2x128xf32>
    %162 = vector.extract_strided_slice %160 {offsets = [0, 0], sizes = [2, 32], strides = [1, 1]} : vector<2x128xf32> to vector<2x32xf32>
    %163 = vector.extract_strided_slice %161 {offsets = [0, 64], sizes = [2, 32], strides = [1, 1]} : vector<2x128xf32> to vector<2x32xf32>
    %164 = vector.extract_strided_slice %160 {offsets = [0, 96], sizes = [2, 32], strides = [1, 1]} : vector<2x128xf32> to vector<2x32xf32>
    %165 = vector.extract_strided_slice %160 {offsets = [0, 32], sizes = [2, 32], strides = [1, 1]} : vector<2x128xf32> to vector<2x32xf32>
    %166 = arith.mulf %165, %149 : vector<2x32xf32>
    %167 = arith.mulf %162, %163 : vector<2x32xf32>
    %168 = arith.addf %166, %167 : vector<2x32xf32>
    %169 = math.tanh %168 : vector<2x32xf32>
    %170 = arith.mulf %164, %169 : vector<2x32xf32>
    %c0_52 = arith.constant 0 : index
    %c0_53 = arith.constant 0 : index
    %171 = vector.load %arg7[%c0_52, %c0_53] : memref<32x128xf32, #tpu.memory_space<vmem>>, vector<32x128xf32>
    %c0_54 = arith.constant 0 : index
    %c0_55 = arith.constant 0 : index
    %172 = vector.load %arg8[%c0_54, %c0_55] : memref<1x128xf32, #tpu.memory_space<vmem>>, vector<1x128xf32>
    %173 = vector.shape_cast %172 : vector<1x128xf32> to vector<1x128xf32>
    %174 = vector.broadcast %173 : vector<1x128xf32> to vector<2x128xf32>
    %c0_56 = arith.constant 0 : index
    %c0_57 = arith.constant 0 : index
    %175 = vector.load %arg9[%c0_56, %c0_57] : memref<32x32xf32, #tpu.memory_space<vmem>>, vector<32x32xf32>
    %c0_58 = arith.constant 0 : index
    %c0_59 = arith.constant 0 : index
    %176 = vector.load %arg10[%c0_58, %c0_59] : memref<1x32xf32, #tpu.memory_space<vmem>>, vector<1x32xf32>
    %177 = vector.shape_cast %176 : vector<1x32xf32> to vector<1x32xf32>
    %178 = vector.broadcast %177 : vector<1x32xf32> to vector<2x32xf32>
    %c0_60 = arith.constant 0 : index
    %c0_61 = arith.constant 0 : index
    %179 = vector.load %arg11[%c0_60, %c0_61] : memref<32x4xf32, #tpu.memory_space<vmem>>, vector<32x4xf32>
    %c0_62 = arith.constant 0 : index
    %c0_63 = arith.constant 0 : index
    %180 = vector.load %arg12[%c0_62, %c0_63] : memref<1x4xf32, #tpu.memory_space<vmem>>, vector<1x4xf32>
    %181 = vector.shape_cast %180 : vector<1x4xf32> to vector<1x4xf32>
    %182 = vector.broadcast %181 : vector<1x4xf32> to vector<2x4xf32>
    %183 = vector.extract_strided_slice %2 {offsets = [0, 7, 0], sizes = [2, 1, 4], strides = [1, 1, 1]} : vector<2x8x4xf32> to vector<2x1x4xf32>
    %184 = vector.shape_cast %183 : vector<2x1x4xf32> to vector<2x4xf32>
    %cst_64 = arith.constant dense<0.000000e+00> : vector<2x128xf32>
    %185 = tpu.matmul %170, %171, %cst_64 {dimension_numbers = #tpu.dot_dimension_numbers<[1], [0], [0], [1], [0, 0, 1, 1], [], []>} : vector<2x32xf32>, vector<32x128xf32>, vector<2x128xf32> -> vector<2x128xf32>
    %186 = arith.addf %185, %174 : vector<2x128xf32>
    %187 = arith.negf %186 : vector<2x128xf32>
    %188 = math.exp %187 : vector<2x128xf32>
    %cst_65 = arith.constant 1.000000e+00 : f32
    %189 = vector.broadcast %cst_65 : f32 to vector<2x128xf32>
    %190 = arith.addf %189, %188 : vector<2x128xf32>
    %191 = arith.divf %189, %190 : vector<2x128xf32>
    %192 = math.tanh %186 : vector<2x128xf32>
    %193 = vector.extract_strided_slice %191 {offsets = [0, 96], sizes = [2, 32], strides = [1, 1]} : vector<2x128xf32> to vector<2x32xf32>
    %194 = vector.extract_strided_slice %191 {offsets = [0, 0], sizes = [2, 32], strides = [1, 1]} : vector<2x128xf32> to vector<2x32xf32>
    %195 = vector.extract_strided_slice %192 {offsets = [0, 64], sizes = [2, 32], strides = [1, 1]} : vector<2x128xf32> to vector<2x32xf32>
    %196 = arith.mulf %194, %195 : vector<2x32xf32>
    %197 = math.tanh %196 : vector<2x32xf32>
    %198 = arith.mulf %193, %197 : vector<2x32xf32>
    %cst_66 = arith.constant dense<0.000000e+00> : vector<2x32xf32>
    %199 = tpu.matmul %198, %175, %cst_66 {dimension_numbers = #tpu.dot_dimension_numbers<[1], [0], [0], [1], [0, 0, 1, 1], [], []>} : vector<2x32xf32>, vector<32x32xf32>, vector<2x32xf32> -> vector<2x32xf32>
    %200 = arith.addf %199, %178 : vector<2x32xf32>
    %cst_67 = arith.constant 0.000000e+00 : f32
    %201 = vector.broadcast %cst_67 : f32 to vector<2x32xf32>
    %202 = arith.maximumf %200, %201 : vector<2x32xf32>
    %cst_68 = arith.constant dense<0.000000e+00> : vector<2x4xf32>
    %203 = tpu.matmul %202, %179, %cst_68 {dimension_numbers = #tpu.dot_dimension_numbers<[1], [0], [0], [1], [0, 0, 1, 1], [], []>} : vector<2x32xf32>, vector<32x4xf32>, vector<2x4xf32> -> vector<2x4xf32>
    %204 = arith.addf %203, %182 : vector<2x4xf32>
    %205 = arith.addf %184, %204 : vector<2x4xf32>
    %c0_69 = arith.constant 0 : index
    %c0_70 = arith.constant 0 : index
    %c0_71 = arith.constant 0 : index
    %206 = vector.load %arg13[%c0_69, %c0_70, %c0_71] : memref<2x3x4xf32, #tpu.memory_space<vmem>>, vector<2x1x4xf32>
    %207 = vector.shape_cast %206 : vector<2x1x4xf32> to vector<2x4xf32>
    %208 = vector.shape_cast %205 : vector<2x4xf32> to vector<2x1x4xf32>
    tpu.vector_store %arg13[%c0_69, %c0_70, %c0_71], %208 {strides = array<i32>} : memref<2x3x4xf32, #tpu.memory_space<vmem>>, vector<2x1x4xf32>,
    %cst_72 = arith.constant dense<0.000000e+00> : vector<2x128xf32>
    %209 = tpu.matmul %198, %171, %cst_72 {dimension_numbers = #tpu.dot_dimension_numbers<[1], [0], [0], [1], [0, 0, 1, 1], [], []>} : vector<2x32xf32>, vector<32x128xf32>, vector<2x128xf32> -> vector<2x128xf32>
    %210 = arith.addf %209, %174 : vector<2x128xf32>
    %211 = arith.negf %210 : vector<2x128xf32>
    %212 = math.exp %211 : vector<2x128xf32>
    %cst_73 = arith.constant 1.000000e+00 : f32
    %213 = vector.broadcast %cst_73 : f32 to vector<2x128xf32>
    %214 = arith.addf %213, %212 : vector<2x128xf32>
    %215 = arith.divf %213, %214 : vector<2x128xf32>
    %216 = math.tanh %210 : vector<2x128xf32>
    %217 = vector.extract_strided_slice %215 {offsets = [0, 96], sizes = [2, 32], strides = [1, 1]} : vector<2x128xf32> to vector<2x32xf32>
    %218 = vector.extract_strided_slice %215 {offsets = [0, 0], sizes = [2, 32], strides = [1, 1]} : vector<2x128xf32> to vector<2x32xf32>
    %219 = vector.extract_strided_slice %216 {offsets = [0, 64], sizes = [2, 32], strides = [1, 1]} : vector<2x128xf32> to vector<2x32xf32>
    %220 = arith.mulf %218, %219 : vector<2x32xf32>
    %221 = math.tanh %220 : vector<2x32xf32>
    %222 = arith.mulf %217, %221 : vector<2x32xf32>
    %cst_74 = arith.constant dense<0.000000e+00> : vector<2x32xf32>
    %223 = tpu.matmul %222, %175, %cst_74 {dimension_numbers = #tpu.dot_dimension_numbers<[1], [0], [0], [1], [0, 0, 1, 1], [], []>} : vector<2x32xf32>, vector<32x32xf32>, vector<2x32xf32> -> vector<2x32xf32>
    %224 = arith.addf %223, %178 : vector<2x32xf32>
    %cst_75 = arith.constant 0.000000e+00 : f32
    %225 = vector.broadcast %cst_75 : f32 to vector<2x32xf32>
    %226 = arith.maximumf %224, %225 : vector<2x32xf32>
    %cst_76 = arith.constant dense<0.000000e+00> : vector<2x4xf32>
    %227 = tpu.matmul %226, %179, %cst_76 {dimension_numbers = #tpu.dot_dimension_numbers<[1], [0], [0], [1], [0, 0, 1, 1], [], []>} : vector<2x32xf32>, vector<32x4xf32>, vector<2x4xf32> -> vector<2x4xf32>
    %228 = arith.addf %227, %182 : vector<2x4xf32>
    %229 = arith.addf %205, %228 : vector<2x4xf32>
    %c0_77 = arith.constant 0 : index
    %c1_78 = arith.constant 1 : index
    %c0_79 = arith.constant 0 : index
    %230 = vector.load %arg13[%c0_77, %c1_78, %c0_79] : memref<2x3x4xf32, #tpu.memory_space<vmem>>, vector<2x1x4xf32>
    %231 = vector.shape_cast %230 : vector<2x1x4xf32> to vector<2x4xf32>
    %232 = vector.shape_cast %229 : vector<2x4xf32> to vector<2x1x4xf32>
    tpu.vector_store %arg13[%c0_77, %c1_78, %c0_79], %232 {strides = array<i32>} : memref<2x3x4xf32, #tpu.memory_space<vmem>>, vector<2x1x4xf32>,
    %cst_80 = arith.constant dense<0.000000e+00> : vector<2x128xf32>
    %233 = tpu.matmul %222, %171, %cst_80 {dimension_numbers = #tpu.dot_dimension_numbers<[1], [0], [0], [1], [0, 0, 1, 1], [], []>} : vector<2x32xf32>, vector<32x128xf32>, vector<2x128xf32> -> vector<2x128xf32>
    %234 = arith.addf %233, %174 : vector<2x128xf32>
    %235 = arith.negf %234 : vector<2x128xf32>
    %236 = math.exp %235 : vector<2x128xf32>
    %cst_81 = arith.constant 1.000000e+00 : f32
    %237 = vector.broadcast %cst_81 : f32 to vector<2x128xf32>
    %238 = arith.addf %237, %236 : vector<2x128xf32>
    %239 = arith.divf %237, %238 : vector<2x128xf32>
    %240 = math.tanh %234 : vector<2x128xf32>
    %241 = vector.extract_strided_slice %239 {offsets = [0, 96], sizes = [2, 32], strides = [1, 1]} : vector<2x128xf32> to vector<2x32xf32>
    %242 = vector.extract_strided_slice %239 {offsets = [0, 0], sizes = [2, 32], strides = [1, 1]} : vector<2x128xf32> to vector<2x32xf32>
    %243 = vector.extract_strided_slice %240 {offsets = [0, 64], sizes = [2, 32], strides = [1, 1]} : vector<2x128xf32> to vector<2x32xf32>
    %244 = arith.mulf %242, %243 : vector<2x32xf32>
    %245 = math.tanh %244 : vector<2x32xf32>
    %246 = arith.mulf %241, %245 : vector<2x32xf32>
    %cst_82 = arith.constant dense<0.000000e+00> : vector<2x32xf32>
    %247 = tpu.matmul %246, %175, %cst_82 {dimension_numbers = #tpu.dot_dimension_numbers<[1], [0], [0], [1], [0, 0, 1, 1], [], []>} : vector<2x32xf32>, vector<32x32xf32>, vector<2x32xf32> -> vector<2x32xf32>
    %248 = arith.addf %247, %178 : vector<2x32xf32>
    %cst_83 = arith.constant 0.000000e+00 : f32
    %249 = vector.broadcast %cst_83 : f32 to vector<2x32xf32>
    %250 = arith.maximumf %248, %249 : vector<2x32xf32>
    %cst_84 = arith.constant dense<0.000000e+00> : vector<2x4xf32>
    %251 = tpu.matmul %250, %179, %cst_84 {dimension_numbers = #tpu.dot_dimension_numbers<[1], [0], [0], [1], [0, 0, 1, 1], [], []>} : vector<2x32xf32>, vector<32x4xf32>, vector<2x4xf32> -> vector<2x4xf32>
    %252 = arith.addf %251, %182 : vector<2x4xf32>
    %253 = arith.addf %229, %252 : vector<2x4xf32>
    %c0_85 = arith.constant 0 : index
    %c2_86 = arith.constant 2 : index
    %c0_87 = arith.constant 0 : index
    %254 = vector.load %arg13[%c0_85, %c2_86, %c0_87] : memref<2x3x4xf32, #tpu.memory_space<vmem>>, vector<2x1x4xf32>
    %255 = vector.shape_cast %254 : vector<2x1x4xf32> to vector<2x4xf32>
    %256 = vector.shape_cast %253 : vector<2x4xf32> to vector<2x1x4xf32>
    tpu.vector_store %arg13[%c0_85, %c2_86, %c0_87], %256 {strides = array<i32>} : memref<2x3x4xf32, #tpu.memory_space<vmem>>, vector<2x1x4xf32>,
    return
  }
  func.func @transform_0(%arg0: i32) -> (i32, i32, i32) {
    %c0_i32 = arith.constant 0 : i32
    %c0_i32_0 = arith.constant 0 : i32
    %c0_i32_1 = arith.constant 0 : i32
    return %arg0, %c0_i32, %c0_i32_0 : i32, i32, i32
  }
  func.func @transform_1(%arg0: i32) -> (i32, i32, i32) {
    %c0_i32 = arith.constant 0 : i32
    %c0_i32_0 = arith.constant 0 : i32
    %c0_i32_1 = arith.constant 0 : i32
    return %arg0, %c0_i32, %c0_i32_0 : i32, i32, i32
  }
  func.func @transform_2(%arg0: i32) -> (i32, i32) {
    %c0_i32 = arith.constant 0 : i32
    %c0_i32_0 = arith.constant 0 : i32
    %c0_i32_1 = arith.constant 0 : i32
    return %c0_i32, %c0_i32_0 : i32, i32
  }
  func.func @transform_3(%arg0: i32) -> (i32, i32) {
    %c0_i32 = arith.constant 0 : i32
    %c0_i32_0 = arith.constant 0 : i32
    %c0_i32_1 = arith.constant 0 : i32
    return %c0_i32, %c0_i32_0 : i32, i32
  }
  func.func @transform_4(%arg0: i32) -> (i32, i32) {
    %c0_i32 = arith.constant 0 : i32
    %c0_i32_0 = arith.constant 0 : i32
    %c0_i32_1 = arith.constant 0 : i32
    return %c0_i32, %c0_i32_0 : i32, i32
  }
  func.func @transform_5(%arg0: i32) -> (i32, i32) {
    %c0_i32 = arith.constant 0 : i32
    %c0_i32_0 = arith.constant 0 : i32
    %c0_i32_1 = arith.constant 0 : i32
    return %c0_i32, %c0_i32_0 : i32, i32
  }
  func.func @transform_6(%arg0: i32) -> (i32, i32) {
    %c0_i32 = arith.constant 0 : i32
    %c0_i32_0 = arith.constant 0 : i32
    %c0_i32_1 = arith.constant 0 : i32
    return %c0_i32, %c0_i32_0 : i32, i32
  }
  func.func @transform_7(%arg0: i32) -> (i32, i32) {
    %c0_i32 = arith.constant 0 : i32
    %c0_i32_0 = arith.constant 0 : i32
    %c0_i32_1 = arith.constant 0 : i32
    return %c0_i32, %c0_i32_0 : i32, i32
  }
  func.func @transform_8(%arg0: i32) -> (i32, i32) {
    %c0_i32 = arith.constant 0 : i32
    %c0_i32_0 = arith.constant 0 : i32
    %c0_i32_1 = arith.constant 0 : i32
    return %c0_i32, %c0_i32_0 : i32, i32
  }
  func.func @transform_9(%arg0: i32) -> (i32, i32) {
    %c0_i32 = arith.constant 0 : i32
    %c0_i32_0 = arith.constant 0 : i32
    %c0_i32_1 = arith.constant 0 : i32
    return %c0_i32, %c0_i32_0 : i32, i32
  }
  func.func @transform_10(%arg0: i32) -> (i32, i32) {
    %c0_i32 = arith.constant 0 : i32
    %c0_i32_0 = arith.constant 0 : i32
    %c0_i32_1 = arith.constant 0 : i32
    return %c0_i32, %c0_i32_0 : i32, i32
  }
  func.func @transform_11(%arg0: i32) -> (i32, i32) {
    %c0_i32 = arith.constant 0 : i32
    %c0_i32_0 = arith.constant 0 : i32
    %c0_i32_1 = arith.constant 0 : i32
    return %c0_i32, %c0_i32_0 : i32, i32
  }
  func.func @transform_12(%arg0: i32) -> (i32, i32, i32) {
    %c0_i32 = arith.constant 0 : i32
    %c0_i32_0 = arith.constant 0 : i32
    %c0_i32_1 = arith.constant 0 : i32
    return %arg0, %c0_i32, %c0_i32_0 : i32, i32, i32
  }
}

</mosaic_0001>

<bundles_post_ra>
// kernel: tpu_custom_call.1
= control target key start
LH: loop header
LB: loop body
LE: loop exit
PB: predicated region body
PF: predicated region fallthrough
CT: control target
= control target key end

     0   :  { %17 = vsyncpa [#allocation4], 0  ;;  %s2914_s0 = inlined_call_operand.vmem [shape: f32[2,8,4], index: 0, kind: input, shape index: {}]   ;;  %s2915_s1 = inlined_call_operand.vmem [shape: f32[2,8,4], index: 1, kind: input, shape index: {}]   ;;  %s2916_s2 = inlined_call_operand.hbm [shape: f32[4,128], index: 2, kind: input, shape index: {}]   ;;  %s2917_s3 = inlined_call_operand.hbm [shape: f32[4,128], index: 3, kind: input, shape index: {}]   ;;  %s2918_s4 = inlined_call_operand.vmem [shape: f32[32,128], index: 4, kind: input, shape index: {}]   ;;  %s2919_s5 = inlined_call_operand.hbm [shape: f32[1,128], index: 5, kind: input, shape index: {}]   ;;  %s2920_s6 = inlined_call_operand.vmem [shape: f32[32,128], index: 6, kind: input, shape index: {}]   ;;  %s2921_s7 = inlined_call_operand.hbm [shape: f32[1,128], index: 7, kind: input, shape index: {}]   ;;  %s2922_s8 = inlined_call_operand.vmem [shape: f32[32,32], index: 8, kind: input, shape index: {}]   ;;  %s2923_s9 = inlined_call_operand.hbm [shape: f32[1,32], index: 9, kind: input, shape index: {}]   ;;  %s2924_s10 = inlined_call_operand.vmem [shape: f32[32,4], index: 10, kind: input, shape index: {}]   ;;  %s2925_s11 = inlined_call_operand.vmem [shape: f32[1,4], index: 11, kind: input, shape index: {}]   ;;  %s2926_s12 = inlined_call_operand.vmem [shape: f32[2,3,4], index: 12, kind: output, shape index: {}]  }
   0x1   :  { %18 = vsyncpa [#allocation6], 0 }
   0x2   :  { %19 = vsyncpa [#allocation9], 0  ;;  %s2464_s21 = smov [#allocation5]   ;;  %s2465_s23 = smov [#allocation8]  }
   0x3   :  { %s40_s22 = sshll.u32 %s2464_s21, 4  ;;  %s64_s24 = sshll.u32 %s2465_s23, 4  ;;  %s41_s22 = int_to_ptr.vmem [resolvable:$true] %s40_s22  ;;  %s65_s24 = int_to_ptr.vmem [resolvable:$true] %s64_s24 }
   0x4   :  { %s2366_s25 = scalar_lea.vmem %s41_s22, 64  ;;  %p2371_p1 = scmp.lt.s32.totalorder %s41_s22, %s41_s22 }
   0x5   :  { %p2367_p0 = scmp.ne.s32.totalorder %s41_s22, %s2366_s25  ;;  %p2372_p2 = scmp.lt.s32.totalorder %s2366_s25, %s2366_s25 }
   0x7   :  { %p2373_p3 = por %p2372_p2, %p2371_p1 }
   0x9   :  { %p2374_p4 = pnand %p2373_p3, %p2367_p0 }
   0xb   :  { %2377 = shalt.err (!%p2374_p4)
}
   0xc   :  { %43 = dma.hbm_to_vmem [thread:$0]  %s2917_s3, 64, %s41_s22, [#allocation6]  }
   0xd   :  { %s2386_s28 = scalar_lea.vmem %s65_s24, 16  ;;  %s2390_s29 = scalar_lea.vmem %s65_s24, 32 }
   0xe   :  { %p2387_p5 = scmp.ne.s32.totalorder %s65_s24, %s2386_s28  ;;  %p2391_p6 = scmp.lt.s32.totalorder %s65_s24, %s65_s24 }
   0xf   :  { %p2392_p7 = scmp.lt.s32.totalorder %s2390_s29, %s2386_s28 }
  0x11   :  { %p2393_p8 = por %p2392_p7, %p2391_p6 }
  0x13   :  { %p2394_p9 = pnand %p2393_p8, %p2387_p5 }
  0x15   :  { %2397 = shalt.err (!%p2394_p9)
}
  0x16   :  { %67 = dma.hbm_to_vmem [thread:$0]  %s2921_s7, 16, %s65_s24, [#allocation9]  }
  0x17   :  { %s2466_s14 = smov [#allocation3]   ;;  %s2467_s16 = smov [#allocation7]  }
  0x18   :  { %s30_s15 = sshll.u32 %s2466_s14, 4  ;;  %s52_s17 = sshll.u32 %s2467_s16, 4  ;;  %s31_s15 = int_to_ptr.vmem [resolvable:$true] %s30_s15  ;;  %s53_s17 = int_to_ptr.vmem [resolvable:$true] %s52_s17 }
  0x19   :  { %s2406_s18 = scalar_lea.vmem %s31_s15, 64  ;;  %p2411_p11 = scmp.lt.s32.totalorder %s31_s15, %s31_s15 }
  0x1a   :  { %p2407_p10 = scmp.ne.s32.totalorder %s31_s15, %s2406_s18  ;;  %p2412_p12 = scmp.lt.s32.totalorder %s2406_s18, %s2406_s18 }
  0x1c   :  { %p2413_p13 = por %p2412_p12, %p2411_p11 }
  0x1e   :  { %p2414_p0 = pnand %p2413_p13, %p2407_p10 }
  0x20   :  { %2417 = shalt.err (!%p2414_p0)
}
  0x21   :  { %33 = dma.hbm_to_vmem [thread:$0]  %s2916_s2, 64, %s31_s15, [#allocation4]  }
  0x22   :  { %s2426_s20 = scalar_lea.vmem %s53_s17, 16  ;;  %s2430_s7 = scalar_lea.vmem %s53_s17, 32 }
  0x23   :  { %p2427_p1 = scmp.ne.s32.totalorder %s53_s17, %s2426_s20  ;;  %p2431_p2 = scmp.lt.s32.totalorder %s53_s17, %s53_s17 }
  0x24   :  { %p2432_p3 = scmp.lt.s32.totalorder %s2430_s7, %s2426_s20 }
  0x26   :  { %p2433_p4 = por %p2432_p3, %p2431_p2 }
  0x28   :  { %p2434_p5 = pnand %p2433_p4, %p2427_p1 }
  0x2a   :  { %2437 = shalt.err (!%p2434_p5)
}
  0x2b   :  { %55 = dma.hbm_to_vmem [thread:$0]  %s2919_s5, 16, %s53_s17, [#allocation6]  }
  0x2c   :  { %s2468_s23 = smov [#allocation10]  }
  0x2d   :  { %s76_s24 = sshll.u32 %s2468_s23, 4  ;;  %s77_s24 = int_to_ptr.vmem [resolvable:$true] %s76_s24 }
  0x2e   :  { %s2446_s25 = scalar_lea.vmem %s77_s24, 16  ;;  %s2450_s26 = scalar_lea.vmem %s77_s24, 32 }
  0x2f   :  { %p2447_p6 = scmp.ne.s32.totalorder %s77_s24, %s2446_s25  ;;  %p2451_p7 = scmp.lt.s32.totalorder %s77_s24, %s77_s24 }
  0x30   :  { %p2452_p8 = scmp.lt.s32.totalorder %s2450_s26, %s2446_s25 }
  0x32   :  { %p2453_p9 = por %p2452_p8, %p2451_p7 }
  0x34   :  { %p2454_p10 = pnand %p2453_p9, %p2447_p6 }
  0x36   :  { %2457 = shalt.err (!%p2454_p10)
}
  0x37   :  { %79 = dma.hbm_to_vmem [thread:$0]  %s2923_s9, 16, %s77_s24, [#allocation9]  }
  0x38   :  { %2458 = dma.done.wait [#allocation4], 64  }
  0x39   :  { %2459 = vsyncadd [#allocation4], 4294967232 }
  0x3a   :  { %2460 = dma.done.wait [#allocation6], 80  }
  0x3b   :  { %2461 = vsyncadd [#allocation6], 4294967216 }
  0x3c   :  { %2462 = dma.done.wait [#allocation9], 32  }
  0x3d   :  { %2463 = vsyncadd [#allocation9], 4294967264  ;;  %vm112_vm0 = vcmask 1043456   ;;  %vm105_vm1 = vcmask 31744   ;;  %v104_v0 = vld [vmem:[#allocation5] sm:$0xf]  ;;  %v289_v8 = vlaneseq }
  0x3e   :  { %v103_v1 = vld [vmem:[#allocation3] sm:$0xf]  ;;  %v2558_v2 = vld [vmem:[%s2915_s1] sm:$0xff]  ;;  %2073 = vmatprep.subr.msk.mxu0 %vm112_vm0, %v104_v0  ;;  %v2566_v4 = vld [vmem:[%s2915_s1 + $0x8] sm:$0xff]  ;;  %v2469_v6 = vmov 1966171168  }
  0x3f   :  { %2078 = vmatprep.subr.msk.mxu1 %vm112_vm0, %v103_v1  ;;  %v99_v3 = vld [vmem:[%s2914_s0] sm:$0xff]  ;;  %v100_v5 = vld [vmem:[%s2914_s0 + $0x8] sm:$0xff]  ;;  %2074 = vmatpush3.msk.msra.mxu0 %vm112_vm0, %v104_v0  ;;  %v287_v7 = vunpack.c.l.s4 %v2469_v6  ;;  %v290_v10 = vshrl.u32 %v289_v8, 7  ;;  %v1948_v13 = vld [vmem:[#allocation7] ss:$0 sm:$0xff]  ;;  %s2470_s0 = smov 64  }
  0x40   :  { %2075 = vmatprep.mubr.msk.f32.mxu0 %vm105_vm1, %v2558_v2  ;;  %2079 = vmatpush3.msk.msra.mxu1 %vm112_vm0, %v103_v1  ;;  %v2577_v55 = vld [vmem:[%s2918_s4 + $0x18] sm:$0xff]  ;;  %v2471_v56 = vmov 0.0   ;;  %v2583_v57 = vld [vmem:[%s2918_s4 + $0x10] sm:$0xff]  ;;  %vm2472_vm2 = vmmov 0   ;;  %v2593_v58 = vld [vmem:[%s2918_s4 + $0x8] sm:$0xff]  ;;  %s2474_s21 = smov 32  }
  0x41   :  { %2080 = vmatprep.mubr.msk.f32.mxu1 %vm105_vm1, %v99_v3  ;;  %2076 = vmatmul.mubr.msk.f32.vlgmr.msra.gmra.mxu0 %vm105_vm1, %v2566_v4  ;;  %v288_v9 = vunpack.c.0.s8 %v287_v7  ;;  %v2602_v59 = vld [vmem:[%s2918_s4] sm:$0xff]  ;;  %s2473_s4 = smov 96   ;;  %vm444_vm3 = vcmask 261120   ;;  %vm1440_vm4 = vcmask 31751  }
  0x42   :  { %2081 = vmatmul.mubr.msk.f32.vlgmr.msra.gmra.mxu1 %vm105_vm1, %v100_v5  ;;  %2083 = vmatprep.subr.mxu0 %v2471_v56 }
  0x43   :  { %v291_v15 = vsub.s32 %v288_v9, %v290_v10  ;;  %2091 = vmatprep.mubr.msk.f32.mxu0 %vm2472_vm2, %v2471_v56  ;;  %2084 = vmatpush3.msra.mxu0 %v2577_v55 }
  0x44   :  { %2094 = vmatprep.subr.mxu1 %v2471_v56  ;;  %2085 = vmatprep.subr.mxu0 %v2471_v56 }
  0x45   :  { %2095 = vmatpush3.msra.mxu1 %v2577_v55  ;;  %2086 = vmatpush3.msra.mxu0 %v2583_v57 }
  0x46   :  { %2096 = vmatprep.subr.mxu1 %v2471_v56  ;;  %2087 = vmatprep.subr.mxu0 %v2471_v56 }
  0x47   :  { %2097 = vmatpush3.msra.mxu1 %v2583_v57  ;;  %2088 = vmatpush3.msra.mxu0 %v2593_v58 }
  0x48   :  { %2098 = vmatprep.subr.mxu1 %v2471_v56  ;;  %2089 = vmatprep.subr.mxu0 %v2471_v56 }
  0x49   :  { %2099 = vmatpush3.msra.mxu1 %v2593_v58  ;;  %2090 = vmatpush3.msra.mxu0 %v2602_v59 }
  0x4a   :  { %2100 = vmatprep.subr.mxu1 %v2471_v56  ;;  %2102 = vmatprep.mubr.msk.f32.mxu1 %vm2472_vm2, %v2471_v56 }
  0x4b   :  { %2101 = vmatpush3.msra.mxu1 %v2602_v59  ;;  %2105 = vmatprep.subr.mxu0 %v2471_v56 }
  0x4c   :  { %2116 = vmatprep.subr.mxu1 %v2471_v56 }
 0x101   :  { %v2077_v11 = vpop.f32.mrf.mxu0 }
 0x102   :  { %v2082_v12 = vpop.f32.mrf.mxu1 }
 0x103   :  { %v272_v14 = vadd.f32 %v2082_v12, %v2077_v11  ;;  %v182_v16 = vpop.f32.mrf.mxu0 }
 0x104   :  { %v266_v17 = vpop.f32.mrf.mxu1 }
 0x105   :  { %v283_v18 = vadd.f32 %v1948_v13, %v272_v14  ;;  %v267_v19 = vadd.f32 %v266_v17, %v182_v16 }
 0x107   :  { %v351_v20 = vcombine.high %v283_v18, %v283_v18  ;;  %v358_v21 = vrot.slane %v283_v18, %v291_v15  ;;  %v282_v22 = vadd.f32 %v1948_v13, %v267_v19 }
 0x109   :  { %v365_v23 = vrot.slane %v351_v20, %v291_v15  ;;  %v366_v24 = vcombine.high %v358_v21, %v358_v21  ;;  %v374_v25 = vrot.slane %v358_v21, %v291_v15  ;;  %1953 = vst.sshfl [vmem:[#allocation2 + $0x1] sm:$0x1 pattern:$0x73625140] %v358_v21  ;;  %v285_v26 = vcombine.high %v282_v22, %v282_v22 }
 0x10a   :  { %v292_v27 = vrot.slane %v282_v22, %v291_v15 }
 0x10b   :  { %v367_v28 = vcombine.high %v365_v23, %v365_v23  ;;  %v381_v29 = vrot.slane %v365_v23, %v291_v15  ;;  %v388_v30 = vrot.slane %v366_v24, %v291_v15  ;;  %v396_v31 = vcombine.high %v374_v25, %v374_v25  ;;  %1954 = vst.sshfl [vmem:[#allocation2 + $0x3] sm:$0x1 pattern:$0x73625140] %v366_v24 }
 0x10c   :  { %1955 = vst.sshfl [vmem:[#allocation2 + $0x9] sm:$0x1 pattern:$0x73625140] %v365_v23  ;;  %v299_v32 = vrot.slane %v285_v26, %v291_v15  ;;  %v300_v33 = vcombine.high %v292_v27, %v292_v27  ;;  %v308_v34 = vrot.slane %v292_v27, %v291_v15 }
 0x10d   :  { %1949 = vst.sshfl [vmem:[#allocation2] sm:$0x1 pattern:$0x73625140] %v292_v27  ;;  %v395_v35 = vrot.slane %v367_v28, %v291_v15  ;;  %v397_v36 = vcombine.high %v381_v29, %v381_v29  ;;  %v398_v37 = vcombine.high %v388_v30, %v388_v30  ;;  %410 = vst [vmem:[#allocation2 + $0x5] sm:$0x1] %v396_v31 }
 0x10e   :  { %1956 = vst.sshfl [vmem:[#allocation2 + $0xb] sm:$0x1 pattern:$0x73625140] %v367_v28  ;;  %v301_v38 = vcombine.high %v299_v32, %v299_v32  ;;  %v315_v39 = vrot.slane %v299_v32, %v291_v15  ;;  %v322_v40 = vrot.slane %v300_v33, %v291_v15  ;;  %v330_v41 = vcombine.high %v308_v34, %v308_v34 }
 0x10f   :  { %1950 = vst.sshfl [vmem:[#allocation2 + $0x2] sm:$0x1 pattern:$0x73625140] %v300_v33  ;;  %v399_v42 = vcombine.high %v395_v35, %v395_v35  ;;  %411 = vst [vmem:[#allocation2 + $0x7] sm:$0x1] %v398_v37 }
 0x110   :  { %1951 = vst.sshfl [vmem:[#allocation2 + $0x8] sm:$0x1 pattern:$0x73625140] %v299_v32  ;;  %414 = vst [vmem:[#allocation2 + $0xd] sm:$0x1] %v397_v36  ;;  %v329_v43 = vrot.slane %v301_v38, %v291_v15  ;;  %v331_v44 = vcombine.high %v315_v39, %v315_v39  ;;  %v332_v45 = vcombine.high %v322_v40, %v322_v40 }
 0x111   :  { %344 = vst [vmem:[#allocation2 + $0x4] sm:$0x1] %v330_v41  ;;  %1952 = vst.sshfl [vmem:[#allocation2 + $0xa] sm:$0x1 pattern:$0x73625140] %v301_v38 }
 0x112   :  { %415 = vst [vmem:[#allocation2 + $0xf] sm:$0x1] %v399_v42  ;;  %v333_v46 = vcombine.high %v329_v43, %v329_v43  ;;  %345 = vst [vmem:[#allocation2 + $0x6] sm:$0x1] %v332_v45 }
 0x113   :  { %348 = vst [vmem:[#allocation2 + $0xc] sm:$0x1] %v331_v44 }
 0x114   :  { %v420_v47 = vld [vmem:[#allocation2] sm:$0x3]  ;;  %349 = vst [vmem:[#allocation2 + $0xe] sm:$0x1] %v333_v46 }
 0x115   :  { %2270 = vtanh.f32 %v420_v47  ;;  %v1957_v49 = vmul.f32 -1.442695, %v420_v47 }
 0x116   :  { %v440_v0 = vld [vmem:[#allocation2 + $0x2] sm:$0x3] }
 0x117   :  { %2272 = vpow2.f32 %v1957_v49 }
 0x118   :  { %v547_v21 = vld [vmem:[#allocation2 + $0x4] sm:$0x3] }
 0x119   :  { %v649_v39 = vld [vmem:[#allocation2 + $0x6] sm:$0x3] }
 0x122   :  { %v2271_v48 = vpop.eup %2270 }
 0x123   :  { %429 = vrot.lane.b32.xlu0 %v2271_v48, %s2470_s0 }
 0x124   :  { %v2273_v50 = vpop.eup %2272 }
 0x125   :  { %v424_v51 = vadd.f32 1.0, %v2273_v50 }
 0x127   :  { %2274 = vrcp.f32 %v424_v51 }
 0x134   :  { %v2275_v52 = vpop.eup %2274 }
 0x195   :  { %v430_v53 = vpop.permute.xlu0 %429 }
 0x196   :  { %v432_v54 = vmul.f32 %v2275_v52, %v430_v53 }
 0x198   :  { %2276 = vtanh.f32 %v432_v54 }
 0x1a5   :  { %v2277_v60 = vpop.eup %2276 }
 0x1a6   :  { %435 = vrot.lane.b32.xlu0 %v2277_v60, %s2473_s4 }
 0x1aa   :  { %526 = vrot.lane.b32.xlu0 %v432_v54, %s2474_s21 }
 0x218   :  { %v436_v61 = vpop.permute.xlu0 %435 }
 0x219   :  { %v438_v62 = vmul.f32 %v2275_v52, %v436_v61 }
 0x21b   :  { %442 = vrot.lane.b32.xlu1 %v438_v62, %s2474_s21  ;;  %v751_v62 = vld [vmem:[#allocation2 + $0x8] sm:$0x3] }
 0x21c   :  { %v527_v13 = vpop.permute.xlu0 %526 }
 0x28d   :  { %v443_v63 = vpop.permute.xlu1 %442 }
 0x28e   :  { %2092 = vmatmul.mubr.msk.f32.vlgmr.msra.gmra.mxu0 %vm444_vm3, %v443_v63 }
 0x28f   :  { %2106 = vmatpush3.msra.mxu0 %v2577_v55  ;;  %2113 = vmatprep.mubr.msk.f32.mxu0 %vm2472_vm2, %v2471_v56 }
 0x290   :  { %2107 = vmatprep.subr.mxu0 %v2471_v56 }
 0x291   :  { %2108 = vmatpush3.msra.mxu0 %v2583_v57 }
 0x292   :  { %2109 = vmatprep.subr.mxu0 %v2471_v56 }
 0x293   :  { %2110 = vmatpush3.msra.mxu0 %v2593_v58 }
 0x294   :  { %2111 = vmatprep.subr.mxu0 %v2471_v56 }
 0x295   :  { %2112 = vmatpush3.msra.mxu0 %v2602_v59 }
 0x296   :  { %2127 = vmatprep.subr.mxu0 %v2471_v56 }
 0x34e   :  { %v513_v1 = vpop.f32.mrf.mxu0 }
 0x34f   :  { %v517_v3 = vadd.f32 %v513_v1, %v440_v0 }
 0x350   :  { %v2093_v5 = vpop.f32.mrf.mxu0 }
 0x351   :  { %2278 = vtanh.f32 %v517_v3  ;;  %v1959_v7 = vmul.f32 -1.442695, %v517_v3 }
 0x353   :  { %2280 = vpow2.f32 %v1959_v7 }
 0x35e   :  { %v2279_v6 = vpop.eup %2278 }
 0x35f   :  { %531 = vrot.lane.b32.xlu1 %v2279_v6, %s2470_s0 }
 0x360   :  { %v2281_v8 = vpop.eup %2280 }
 0x361   :  { %v521_v9 = vadd.f32 1.0, %v2281_v8 }
 0x363   :  { %2282 = vrcp.f32 %v521_v9 }
 0x370   :  { %v2283_v10 = vpop.eup %2282 }
 0x371   :  { %v529_v14 = vmul.f32 %v2283_v10, %v527_v13 }
 0x3d1   :  { %v532_v11 = vpop.permute.xlu1 %531 }
 0x3d2   :  { %v534_v12 = vmul.f32 %v2283_v10, %v532_v11 }
 0x3d4   :  { %536 = vrot.lane.b32.xlu1 %v534_v12, %s2474_s21 }
 0x446   :  { %v537_v15 = vpop.permute.xlu1 %536 }
 0x447   :  { %v539_v16 = vadd.f32 %v537_v15, %v529_v14 }
 0x449   :  { %2284 = vtanh.f32 %v539_v16 }
 0x456   :  { %v2285_v17 = vpop.eup %2284 }
 0x457   :  { %542 = vrot.lane.b32.xlu0 %v2285_v17, %s2470_s0 }
 0x4c9   :  { %v543_v18 = vpop.permute.xlu0 %542 }
 0x4ca   :  { %v545_v19 = vmul.f32 %v2283_v10, %v543_v18  ;;  %v853_v18 = vld [vmem:[#allocation2 + $0xa] sm:$0x3] }
 0x4cc   :  { %549 = vrot.lane.b32.xlu1 %v545_v19, %s2474_s21 }
 0x53e   :  { %v550_v20 = vpop.permute.xlu1 %549 }
 0x53f   :  { %2103 = vmatmul.mubr.msk.f32.vlgmr.msra.gmra.mxu1 %vm444_vm3, %v550_v20 }
 0x540   :  { %2117 = vmatpush3.msra.mxu1 %v2577_v55  ;;  %2124 = vmatprep.mubr.msk.f32.mxu1 %vm2472_vm2, %v2471_v56 }
 0x541   :  { %2118 = vmatprep.subr.mxu1 %v2471_v56 }
 0x542   :  { %2119 = vmatpush3.msra.mxu1 %v2583_v57 }
 0x543   :  { %2120 = vmatprep.subr.mxu1 %v2471_v56 }
 0x544   :  { %2121 = vmatpush3.msra.mxu1 %v2593_v58 }
 0x545   :  { %2122 = vmatprep.subr.mxu1 %v2471_v56 }
 0x546   :  { %2123 = vmatpush3.msra.mxu1 %v2602_v59 }
 0x547   :  { %2138 = vmatprep.subr.mxu1 %v2471_v56 }
 0x5ff   :  { %v619_v22 = vpop.f32.mrf.mxu1 }
 0x600   :  { %v623_v23 = vadd.f32 %v619_v22, %v547_v21 }
 0x601   :  { %v2104_v24 = vpop.f32.mrf.mxu1 }
 0x602   :  { %2286 = vtanh.f32 %v623_v23  ;;  %v1961_v26 = vmul.f32 -1.442695, %v623_v23 }
 0x604   :  { %2288 = vpow2.f32 %v1961_v26 }
 0x60f   :  { %v2287_v25 = vpop.eup %2286 }
 0x610   :  { %633 = vrot.lane.b32.xlu0 %v2287_v25, %s2470_s0 }
 0x611   :  { %v2289_v27 = vpop.eup %2288 }
 0x612   :  { %v627_v28 = vadd.f32 1.0, %v2289_v27 }
 0x614   :  { %2290 = vrcp.f32 %v627_v28 }
 0x621   :  { %v2291_v29 = vpop.eup %2290 }
 0x622   :  { %v631_v32 = vmul.f32 %v2291_v29, %v539_v16 }
 0x682   :  { %v634_v30 = vpop.permute.xlu0 %633 }
 0x683   :  { %v636_v31 = vmul.f32 %v2291_v29, %v634_v30 }
 0x685   :  { %638 = vrot.lane.b32.xlu1 %v636_v31, %s2474_s21 }
 0x6f7   :  { %v639_v33 = vpop.permute.xlu1 %638 }
 0x6f8   :  { %v641_v34 = vadd.f32 %v639_v33, %v631_v32  ;;  %v955_v32 = vld [vmem:[#allocation2 + $0xc] sm:$0x3] }
 0x6fa   :  { %2292 = vtanh.f32 %v641_v34 }
 0x707   :  { %v2293_v35 = vpop.eup %2292 }
 0x708   :  { %644 = vrot.lane.b32.xlu0 %v2293_v35, %s2470_s0 }
 0x77a   :  { %v645_v36 = vpop.permute.xlu0 %644 }
 0x77b   :  { %v647_v37 = vmul.f32 %v2291_v29, %v645_v36 }
 0x77d   :  { %651 = vrot.lane.b32.xlu1 %v647_v37, %s2474_s21 }
 0x7ef   :  { %v652_v38 = vpop.permute.xlu1 %651 }
 0x7f0   :  { %2114 = vmatmul.mubr.msk.f32.vlgmr.msra.gmra.mxu0 %vm444_vm3, %v652_v38 }
 0x7f1   :  { %2128 = vmatpush3.msra.mxu0 %v2577_v55  ;;  %2135 = vmatprep.mubr.msk.f32.mxu0 %vm2472_vm2, %v2471_v56 }
 0x7f2   :  { %2129 = vmatprep.subr.mxu0 %v2471_v56 }
 0x7f3   :  { %2130 = vmatpush3.msra.mxu0 %v2583_v57 }
 0x7f4   :  { %2131 = vmatprep.subr.mxu0 %v2471_v56 }
 0x7f5   :  { %2132 = vmatpush3.msra.mxu0 %v2593_v58 }
 0x7f6   :  { %2133 = vmatprep.subr.mxu0 %v2471_v56 }
 0x7f7   :  { %2134 = vmatpush3.msra.mxu0 %v2602_v59 }
 0x7f8   :  { %2149 = vmatprep.subr.mxu0 %v2471_v56 }
 0x8b0   :  { %v721_v40 = vpop.f32.mrf.mxu0 }
 0x8b1   :  { %v725_v41 = vadd.f32 %v721_v40, %v649_v39 }
 0x8b2   :  { %v2115_v42 = vpop.f32.mrf.mxu0 }
 0x8b3   :  { %2294 = vtanh.f32 %v725_v41  ;;  %v1963_v44 = vmul.f32 -1.442695, %v725_v41 }
 0x8b5   :  { %2296 = vpow2.f32 %v1963_v44 }
 0x8c0   :  { %v2295_v43 = vpop.eup %2294 }
 0x8c1   :  { %735 = vrot.lane.b32.xlu0 %v2295_v43, %s2470_s0 }
 0x8c2   :  { %v2297_v45 = vpop.eup %2296 }
 0x8c3   :  { %v729_v46 = vadd.f32 1.0, %v2297_v45 }
 0x8c5   :  { %2298 = vrcp.f32 %v729_v46 }
 0x8d2   :  { %v2299_v47 = vpop.eup %2298 }
 0x8d3   :  { %v733_v50 = vmul.f32 %v2299_v47, %v641_v34 }
 0x933   :  { %v736_v48 = vpop.permute.xlu0 %735 }
 0x934   :  { %v738_v49 = vmul.f32 %v2299_v47, %v736_v48 }
 0x936   :  { %740 = vrot.lane.b32.xlu1 %v738_v49, %s2474_s21 }
 0x9a8   :  { %v741_v51 = vpop.permute.xlu1 %740 }
 0x9a9   :  { %v743_v52 = vadd.f32 %v741_v51, %v733_v50  ;;  %v1057_v50 = vld [vmem:[#allocation2 + $0xe] sm:$0x3] }
 0x9ab   :  { %2300 = vtanh.f32 %v743_v52 }
 0x9b8   :  { %v2301_v53 = vpop.eup %2300 }
 0x9b9   :  { %746 = vrot.lane.b32.xlu0 %v2301_v53, %s2470_s0 }
 0xa2b   :  { %v747_v54 = vpop.permute.xlu0 %746 }
 0xa2c   :  { %v749_v60 = vmul.f32 %v2299_v47, %v747_v54 }
 0xa2e   :  { %753 = vrot.lane.b32.xlu1 %v749_v60, %s2474_s21 }
 0xaa0   :  { %v754_v61 = vpop.permute.xlu1 %753 }
 0xaa1   :  { %2125 = vmatmul.mubr.msk.f32.vlgmr.msra.gmra.mxu1 %vm444_vm3, %v754_v61 }
 0xaa2   :  { %2139 = vmatpush3.msra.mxu1 %v2577_v55  ;;  %2146 = vmatprep.mubr.msk.f32.mxu1 %vm2472_vm2, %v2471_v56 }
 0xaa3   :  { %2140 = vmatprep.subr.mxu1 %v2471_v56 }
 0xaa4   :  { %2141 = vmatpush3.msra.mxu1 %v2583_v57 }
 0xaa5   :  { %2142 = vmatprep.subr.mxu1 %v2471_v56 }
 0xaa6   :  { %2143 = vmatpush3.msra.mxu1 %v2593_v58 }
 0xaa7   :  { %2144 = vmatprep.subr.mxu1 %v2471_v56 }
 0xaa8   :  { %2145 = vmatpush3.msra.mxu1 %v2602_v59 }
 0xaa9   :  { %2160 = vmatprep.subr.mxu1 %v2471_v56 }
 0xb61   :  { %v823_v63 = vpop.f32.mrf.mxu1 }
 0xb62   :  { %v827_v0 = vadd.f32 %v823_v63, %v751_v62 }
 0xb63   :  { %v2126_v1 = vpop.f32.mrf.mxu1 }
 0xb64   :  { %2302 = vtanh.f32 %v827_v0  ;;  %v1965_v5 = vmul.f32 -1.442695, %v827_v0 }
 0xb66   :  { %2304 = vpow2.f32 %v1965_v5 }
 0xb71   :  { %v2303_v3 = vpop.eup %2302 }
 0xb72   :  { %837 = vrot.lane.b32.xlu0 %v2303_v3, %s2470_s0 }
 0xb73   :  { %v2305_v6 = vpop.eup %2304 }
 0xb74   :  { %v831_v7 = vadd.f32 1.0, %v2305_v6 }
 0xb76   :  { %2306 = vrcp.f32 %v831_v7  ;;  %v2709_v7 = vld [vmem:[%s2920_s6 + $0x18] sm:$0xff] }
 0xb83   :  { %v2307_v8 = vpop.eup %2306 }
 0xb84   :  { %v835_v11 = vmul.f32 %v2307_v8, %v743_v52 }
 0xbe4   :  { %v838_v9 = vpop.permute.xlu0 %837 }
 0xbe5   :  { %v840_v10 = vmul.f32 %v2307_v8, %v838_v9  ;;  %v2721_v9 = vld [vmem:[%s2920_s6 + $0x8] sm:$0xff] }
 0xbe7   :  { %842 = vrot.lane.b32.xlu1 %v840_v10, %s2474_s21  ;;  %v2728_v10 = vld [vmem:[%s2920_s6] sm:$0xff] }
 0xc59   :  { %v843_v12 = vpop.permute.xlu1 %842 }
 0xc5a   :  { %v845_v13 = vadd.f32 %v843_v12, %v835_v11 }
 0xc5c   :  { %2308 = vtanh.f32 %v845_v13 }
 0xc69   :  { %v2309_v14 = vpop.eup %2308 }
 0xc6a   :  { %848 = vrot.lane.b32.xlu0 %v2309_v14, %s2470_s0 }
 0xcdc   :  { %v849_v15 = vpop.permute.xlu0 %848 }
 0xcdd   :  { %v851_v16 = vmul.f32 %v2307_v8, %v849_v15  ;;  %v2714_v8 = vld [vmem:[%s2920_s6 + $0x10] sm:$0xff]  ;;  %v2739_v15 = vld [vmem:[#allocation8] ss:$0 sm:$0xff] }
 0xcdf   :  { %855 = vrot.lane.b32.xlu1 %v851_v16, %s2474_s21 }
 0xd51   :  { %v856_v17 = vpop.permute.xlu1 %855 }
 0xd52   :  { %2136 = vmatmul.mubr.msk.f32.vlgmr.msra.gmra.mxu0 %vm444_vm3, %v856_v17 }
 0xd53   :  { %2150 = vmatpush3.msra.mxu0 %v2577_v55  ;;  %2157 = vmatprep.mubr.msk.f32.mxu0 %vm2472_vm2, %v2471_v56 }
 0xd54   :  { %2151 = vmatprep.subr.mxu0 %v2471_v56 }
 0xd55   :  { %2152 = vmatpush3.msra.mxu0 %v2583_v57 }
 0xd56   :  { %2153 = vmatprep.subr.mxu0 %v2471_v56 }
 0xd57   :  { %2154 = vmatpush3.msra.mxu0 %v2593_v58 }
 0xd58   :  { %2155 = vmatprep.subr.mxu0 %v2471_v56 }
 0xd59   :  { %2156 = vmatpush3.msra.mxu0 %v2602_v59 }
 0xd5a   :  { %2171 = vmatprep.subr.mxu0 %v2471_v56 }
 0xe12   :  { %v925_v19 = vpop.f32.mrf.mxu0 }
 0xe13   :  { %v929_v55 = vadd.f32 %v925_v19, %v853_v18 }
 0xe14   :  { %v2137_v20 = vpop.f32.mrf.mxu0 }
 0xe15   :  { %2310 = vtanh.f32 %v929_v55  ;;  %v1967_v22 = vmul.f32 -1.442695, %v929_v55 }
 0xe17   :  { %2312 = vpow2.f32 %v1967_v22 }
 0xe22   :  { %v2311_v21 = vpop.eup %2310 }
 0xe23   :  { %939 = vrot.lane.b32.xlu0 %v2311_v21, %s2470_s0 }
 0xe24   :  { %v2313_v57 = vpop.eup %2312 }
 0xe25   :  { %v933_v23 = vadd.f32 1.0, %v2313_v57 }
 0xe27   :  { %2314 = vrcp.f32 %v933_v23 }
 0xe34   :  { %v2315_v58 = vpop.eup %2314 }
 0xe35   :  { %v937_v59 = vmul.f32 %v2315_v58, %v845_v13 }
 0xe95   :  { %v940_v24 = vpop.permute.xlu0 %939 }
 0xe96   :  { %v942_v25 = vmul.f32 %v2315_v58, %v940_v24  ;;  %v2751_v24 = vld [vmem:[%s2922_s8 + $0x10] sm:$0xff] }
 0xe98   :  { %944 = vrot.lane.b32.xlu1 %v942_v25, %s2474_s21  ;;  %v2758_v25 = vld [vmem:[%s2922_s8 + $0x8] sm:$0xff] }
 0xf0a   :  { %v945_v26 = vpop.permute.xlu1 %944 }
 0xf0b   :  { %v947_v27 = vadd.f32 %v945_v26, %v937_v59  ;;  %v2765_v59 = vld [vmem:[%s2922_s8] sm:$0xff] }
 0xf0d   :  { %2316 = vtanh.f32 %v947_v27 }
 0xf1a   :  { %v2317_v28 = vpop.eup %2316 }
 0xf1b   :  { %950 = vrot.lane.b32.xlu0 %v2317_v28, %s2470_s0 }
 0xf8d   :  { %v951_v29 = vpop.permute.xlu0 %950 }
 0xf8e   :  { %v953_v30 = vmul.f32 %v2315_v58, %v951_v29  ;;  %v2746_v58 = vld [vmem:[%s2922_s8 + $0x18] sm:$0xff] }
 0xf90   :  { %957 = vrot.lane.b32.xlu1 %v953_v30, %s2474_s21 }
0x1002   :  { %v958_v31 = vpop.permute.xlu1 %957 }
0x1003   :  { %2147 = vmatmul.mubr.msk.f32.vlgmr.msra.gmra.mxu1 %vm444_vm3, %v958_v31  ;;  %v2799_v31 = vld [vmem:[%s2924_s10 + $0x10] sm:$0xff] }
0x1004   :  { %2168 = vmatprep.mubr.msk.f32.mxu1 %vm2472_vm2, %v2471_v56  ;;  %2161 = vmatpush3.msra.mxu1 %v2709_v7 }
0x1005   :  { %2162 = vmatprep.subr.mxu1 %v2471_v56 }
0x1006   :  { %2163 = vmatpush3.msra.mxu1 %v2714_v8 }
0x1007   :  { %2164 = vmatprep.subr.mxu1 %v2471_v56 }
0x1008   :  { %2165 = vmatpush3.msra.mxu1 %v2721_v9 }
0x1009   :  { %2166 = vmatprep.subr.mxu1 %v2471_v56 }
0x100a   :  { %2167 = vmatpush3.msra.mxu1 %v2728_v10 }
0x100b   :  { %2182 = vmatprep.subr.mxu1 %v2471_v56 }
0x10c3   :  { %v1027_v33 = vpop.f32.mrf.mxu1 }
0x10c4   :  { %v1031_v34 = vadd.f32 %v1027_v33, %v955_v32  ;;  %v2807_v32 = vld [vmem:[%s2924_s10 + $0x8] sm:$0xff]  ;;  %v2814_v33 = vld [vmem:[%s2924_s10] sm:$0xff] }
0x10c5   :  { %v2148_v35 = vpop.f32.mrf.mxu1 }
0x10c6   :  { %2318 = vtanh.f32 %v1031_v34  ;;  %v1969_v37 = vmul.f32 -1.442695, %v1031_v34  ;;  %v2823_v34 = vld [vmem:[#allocation10] ss:$0 sm:$0xff] }
0x10c8   :  { %2320 = vpow2.f32 %v1969_v37 }
0x10d3   :  { %v2319_v36 = vpop.eup %2318 }
0x10d4   :  { %1041 = vrot.lane.b32.xlu0 %v2319_v36, %s2470_s0 }
0x10d5   :  { %v2321_v38 = vpop.eup %2320 }
0x10d6   :  { %v1035_v39 = vadd.f32 1.0, %v2321_v38 }
0x10d8   :  { %2322 = vrcp.f32 %v1035_v39 }
0x10e5   :  { %v2323_v40 = vpop.eup %2322 }
0x10e6   :  { %v1039_v43 = vmul.f32 %v2323_v40, %v947_v27  ;;  %v2775_v27 = vld [vmem:[%s2924_s10 + $0x18] sm:$0xff] }
0x1146   :  { %v1042_v41 = vpop.permute.xlu0 %1041 }
0x1147   :  { %v1044_v42 = vmul.f32 %v2323_v40, %v1042_v41 }
0x1149   :  { %1046 = vrot.lane.b32.xlu1 %v1044_v42, %s2474_s21 }
0x11bb   :  { %v1047_v44 = vpop.permute.xlu1 %1046 }
0x11bc   :  { %v1049_v45 = vadd.f32 %v1047_v44, %v1039_v43 }
0x11be   :  { %2324 = vtanh.f32 %v1049_v45 }
0x11cb   :  { %v2325_v46 = vpop.eup %2324 }
0x11cc   :  { %1052 = vrot.lane.b32.xlu0 %v2325_v46, %s2470_s0 }
0x123e   :  { %v1053_v47 = vpop.permute.xlu0 %1052 }
0x123f   :  { %v1055_v48 = vmul.f32 %v2323_v40, %v1053_v47 }
0x1241   :  { %1059 = vrot.lane.b32.xlu1 %v1055_v48, %s2474_s21 }
0x12b3   :  { %v1060_v49 = vpop.permute.xlu1 %1059 }
0x12b4   :  { %2158 = vmatmul.mubr.msk.f32.vlgmr.msra.gmra.mxu0 %vm444_vm3, %v1060_v49 }
0x12b5   :  { %2179 = vmatprep.mubr.msk.f32.mxu0 %vm2472_vm2, %v2471_v56  ;;  %2172 = vmatpush3.msra.mxu0 %v2746_v58 }
0x12b6   :  { %2173 = vmatprep.subr.mxu0 %v2471_v56 }
0x12b7   :  { %2174 = vmatpush3.msra.mxu0 %v2751_v24 }
0x12b8   :  { %2175 = vmatprep.subr.mxu0 %v2471_v56 }
0x12b9   :  { %2176 = vmatpush3.msra.mxu0 %v2758_v25 }
0x12ba   :  { %2177 = vmatprep.subr.mxu0 %v2471_v56 }
0x12bb   :  { %2178 = vmatpush3.msra.mxu0 %v2765_v59 }
0x12bc   :  { %2193 = vmatprep.subr.mxu0 %v2471_v56 }
0x1374   :  { %v1129_v51 = vpop.f32.mrf.mxu0 }
0x1375   :  { %v1133_v52 = vadd.f32 %v1129_v51, %v1057_v50  ;;  %v2843_v50 = vld [vmem:[%s2925_s11] ss:$0 sm:$0xff] }
0x1376   :  { %v2159_v53 = vpop.f32.mrf.mxu0 }
0x1377   :  { %2326 = vtanh.f32 %v1133_v52  ;;  %v1971_v60 = vmul.f32 -1.442695, %v1133_v52 }
0x1379   :  { %2328 = vpow2.f32 %v1971_v60 }
0x1384   :  { %v2327_v54 = vpop.eup %2326 }
0x1385   :  { %1143 = vrot.lane.b32.xlu0 %v2327_v54, %s2470_s0 }
0x1386   :  { %v2329_v61 = vpop.eup %2328 }
0x1387   :  { %v1137_v62 = vadd.f32 1.0, %v2329_v61 }
0x1389   :  { %2330 = vrcp.f32 %v1137_v62 }
0x1396   :  { %v2331_v63 = vpop.eup %2330 }
0x1397   :  { %v1141_v3 = vmul.f32 %v2331_v63, %v1049_v45 }
0x13f7   :  { %v1144_v0 = vpop.permute.xlu0 %1143 }
0x13f8   :  { %v1146_v1 = vmul.f32 %v2331_v63, %v1144_v0 }
0x13fa   :  { %1148 = vrot.lane.b32.xlu1 %v1146_v1, %s2474_s21 }
0x146c   :  { %v1149_v5 = vpop.permute.xlu1 %1148 }
0x146d   :  { %v1151_v6 = vadd.f32 %v1149_v5, %v1141_v3 }
0x146f   :  { %2332 = vtanh.f32 %v1151_v6 }
0x147c   :  { %v2333_v11 = vpop.eup %2332 }
0x147d   :  { %1154 = vrot.lane.b32.xlu0 %v2333_v11, %s2470_s0 }
0x14ef   :  { %v1155_v12 = vpop.permute.xlu0 %1154 }
0x14f0   :  { %v1157_v13 = vmul.f32 %v2331_v63, %v1155_v12 }
0x14f2   :  { %1192 = vrot.lane.b32.xlu1 %v1157_v13, %s2474_s21 }
0x1564   :  { %v1193_v14 = vpop.permute.xlu1 %1192 }
0x1565   :  { %2169 = vmatmul.mubr.msk.f32.vlgmr.msra.gmra.mxu1 %vm444_vm3, %v1193_v14 }
0x1566   :  { %2190 = vmatprep.mubr.msk.f32.mxu1 %vm2472_vm2, %v2471_v56  ;;  %2183 = vmatpush3.msra.mxu1 %v2775_v27 }
0x1567   :  { %2184 = vmatprep.subr.mxu1 %v2471_v56 }
0x1568   :  { %2185 = vmatpush3.msra.mxu1 %v2799_v31 }
0x1569   :  { %2186 = vmatprep.subr.mxu1 %v2471_v56 }
0x156a   :  { %2187 = vmatpush3.msra.mxu1 %v2807_v32 }
0x156b   :  { %2188 = vmatprep.subr.mxu1 %v2471_v56 }
0x156c   :  { %2189 = vmatpush3.msra.mxu1 %v2814_v33 }
0x156d   :  { %2204 = vmatprep.subr.mxu1 %v2471_v56 }
0x1625   :  { %v1262_v16 = vpop.f32.mrf.mxu1 }
0x1626   :  { %v1263_v17 = vadd.f32 %v2739_v15, %v1262_v16 }
0x1627   :  { %v2170_v18 = vpop.f32.mrf.mxu1 }
0x1628   :  { %2334 = vtanh.f32 %v1263_v17  ;;  %v1976_v55 = vmul.f32 -1.442695, %v1263_v17 }
0x162a   :  { %2336 = vpow2.f32 %v1976_v55 }
0x1635   :  { %v2335_v19 = vpop.eup %2334 }
0x1636   :  { %1274 = vrot.lane.b32.xlu0 %v2335_v19, %s2470_s0 }
0x1637   :  { %v2337_v20 = vpop.eup %2336 }
0x1638   :  { %v1269_v21 = vadd.f32 1.0, %v2337_v20 }
0x163a   :  { %2338 = vrcp.f32 %v1269_v21 }
0x1647   :  { %v2339_v22 = vpop.eup %2338 }
0x16a8   :  { %v1275_v57 = vpop.permute.xlu0 %1274 }
0x16a9   :  { %v1277_v23 = vmul.f32 %v2339_v22, %v1275_v57 }
0x16ab   :  { %2340 = vtanh.f32 %v1277_v23 }
0x16b8   :  { %v2341_v26 = vpop.eup %2340 }
0x16b9   :  { %1280 = vrot.lane.b32.xlu1 %v2341_v26, %s2473_s4 }
0x172b   :  { %v1281_v28 = vpop.permute.xlu1 %1280 }
0x172c   :  { %v1283_v29 = vmul.f32 %v2339_v22, %v1281_v28 }
0x172e   :  { %1285 = vrot.lane.b32.xlu0 %v1283_v29, %s2474_s21 }
0x17a0   :  { %v1286_v30 = vpop.permute.xlu0 %1285 }
0x17a1   :  { %2180 = vmatmul.mubr.msk.f32.vlgmr.msra.gmra.mxu0 %vm444_vm3, %v1286_v30 }
0x17a2   :  { %2194 = vmatpush3.msra.mxu0 %v2709_v7  ;;  %2201 = vmatprep.mubr.msk.f32.mxu0 %vm2472_vm2, %v2471_v56 }
0x17a3   :  { %2195 = vmatprep.subr.mxu0 %v2471_v56 }
0x17a4   :  { %2196 = vmatpush3.msra.mxu0 %v2714_v8 }
0x17a5   :  { %2197 = vmatprep.subr.mxu0 %v2471_v56 }
0x17a6   :  { %2198 = vmatpush3.msra.mxu0 %v2721_v9 }
0x17a7   :  { %2199 = vmatprep.subr.mxu0 %v2471_v56 }
0x17a8   :  { %2200 = vmatpush3.msra.mxu0 %v2728_v10 }
0x17a9   :  { %2202 = vmatmul.mubr.msk.f32.vlgmr.msra.gmra.mxu0 %vm444_vm3, %v1286_v30  ;;  %2215 = vmatprep.subr.mxu0 %v2471_v56 }
0x17aa   :  { %2216 = vmatpush3.msra.mxu0 %v2775_v27  ;;  %2223 = vmatprep.mubr.msk.f32.mxu0 %vm2472_vm2, %v2471_v56 }
0x17ab   :  { %2217 = vmatprep.subr.mxu0 %v2471_v56 }
0x17ac   :  { %2218 = vmatpush3.msra.mxu0 %v2799_v31 }
0x17ad   :  { %2219 = vmatprep.subr.mxu0 %v2471_v56 }
0x17ae   :  { %2220 = vmatpush3.msra.mxu0 %v2807_v32 }
0x17af   :  { %2221 = vmatprep.subr.mxu0 %v2471_v56 }
0x17b0   :  { %2222 = vmatpush3.msra.mxu0 %v2814_v33 }
0x17b1   :  { %2237 = vmatprep.subr.mxu0 %v2471_v56 }
0x1861   :  { %v1355_v35 = vpop.f32.mrf.mxu0 }
0x1862   :  { %v1356_v36 = vadd.f32 %v2823_v34, %v1355_v35 }
0x1863   :  { %v2181_v37 = vpop.f32.mrf.mxu0 }
0x1864   :  { %v1359_v38 = vmax.f32 %v1356_v36, 0.0 }
0x1866   :  { %2191 = vmatmul.mubr.msk.f32.vlgmr.msra.gmra.mxu1 %vm444_vm3, %v1359_v38 }
0x1867   :  { %2205 = vmatpush3.msra.mxu1 %v2746_v58  ;;  %2212 = vmatprep.mubr.msk.f32.mxu1 %vm2472_vm2, %v2471_v56 }
0x1868   :  { %2206 = vmatprep.subr.mxu1 %v2471_v56 }
0x1869   :  { %v1509_v39 = vpop.f32.mrf.mxu0  ;;  %2207 = vmatpush3.msra.mxu1 %v2751_v24 }
0x186a   :  { %v1510_v40 = vadd.f32 %v2739_v15, %v1509_v39  ;;  %2208 = vmatprep.subr.mxu1 %v2471_v56 }
0x186b   :  { %v2203_v41 = vpop.f32.mrf.mxu0  ;;  %2209 = vmatpush3.msra.mxu1 %v2758_v25 }
0x186c   :  { %2342 = vtanh.f32 %v1510_v40  ;;  %2210 = vmatprep.subr.mxu1 %v2471_v56  ;;  %v1980_v43 = vmul.f32 -1.442695, %v1510_v40 }
0x186d   :  { %2211 = vmatpush3.msra.mxu1 %v2765_v59 }
0x186e   :  { %2226 = vmatprep.subr.mxu1 %v2471_v56  ;;  %2344 = vpow2.f32 %v1980_v43 }
0x1879   :  { %v2343_v42 = vpop.eup %2342 }
0x187a   :  { %1521 = vrot.lane.b32.xlu1 %v2343_v42, %s2470_s0 }
0x187b   :  { %v2345_v44 = vpop.eup %2344 }
0x187c   :  { %v1516_v45 = vadd.f32 1.0, %v2345_v44 }
0x187e   :  { %2346 = vrcp.f32 %v1516_v45 }
0x188b   :  { %v2347_v46 = vpop.eup %2346 }
0x18ec   :  { %v1522_v47 = vpop.permute.xlu1 %1521 }
0x18ed   :  { %v1524_v48 = vmul.f32 %v2347_v46, %v1522_v47 }
0x18ef   :  { %2348 = vtanh.f32 %v1524_v48 }
0x18fc   :  { %v2349_v49 = vpop.eup %2348 }
0x18fd   :  { %1527 = vrot.lane.b32.xlu0 %v2349_v49, %s2473_s4 }
0x1926   :  { %v1429_v51 = vpop.f32.mrf.mxu1 }
0x1927   :  { %v1430_v52 = vadd.f32 %v2843_v50, %v1429_v51 }
0x1928   :  { %v2192_v53 = vpop.f32.mrf.mxu1 }
0x1929   :  { %v1434_v54 = vrot.slane %v1430_v52, 1  ;;  %v1435_v60 = vrot.slane %v1430_v52, 2 }
0x192b   :  { %v1438_v61 = vadd.f32 %v1434_v54, %v2558_v2  ;;  %v1439_v62 = vadd.f32 %v1435_v60, %v2566_v4 }
0x192d   :  { %1441 = vst.msk [vmem:[%s2926_s12 - $0x7] sm:$0x80] %vm1440_vm4, %v1438_v61  ;;  %1442 = vst.msk [vmem:[%s2926_s12 - $0x3] sm:$0x80] %vm1440_vm4, %v1439_v62 }
0x196f   :  { %v1528_v63 = vpop.permute.xlu0 %1527 }
0x1970   :  { %v1530_v0 = vmul.f32 %v2347_v46, %v1528_v63 }
0x1972   :  { %1532 = vrot.lane.b32.xlu1 %v1530_v0, %s2474_s21 }
0x19e4   :  { %v1533_v1 = vpop.permute.xlu1 %1532 }
0x19e5   :  { %2213 = vmatmul.mubr.msk.f32.vlgmr.msra.gmra.mxu1 %vm444_vm3, %v1533_v1 }
0x19e6   :  { %2227 = vmatpush3.msra.mxu1 %v2709_v7  ;;  %2234 = vmatprep.mubr.msk.f32.mxu1 %vm2472_vm2, %v2471_v56 }
0x19e7   :  { %2228 = vmatprep.subr.mxu1 %v2471_v56 }
0x19e8   :  { %2229 = vmatpush3.msra.mxu1 %v2714_v8 }
0x19e9   :  { %2230 = vmatprep.subr.mxu1 %v2471_v56 }
0x19ea   :  { %2231 = vmatpush3.msra.mxu1 %v2721_v9 }
0x19eb   :  { %2232 = vmatprep.subr.mxu1 %v2471_v56 }
0x19ec   :  { %2233 = vmatpush3.msra.mxu1 %v2728_v10 }
0x19ed   :  { %2235 = vmatmul.mubr.msk.f32.vlgmr.msra.gmra.mxu1 %vm444_vm3, %v1533_v1  ;;  %2248 = vmatprep.subr.mxu1 %v2471_v56 }
0x19ee   :  { %2249 = vmatpush3.msra.mxu1 %v2775_v27  ;;  %2256 = vmatprep.mubr.msk.f32.mxu1 %vm2472_vm2, %v2471_v56 }
0x19ef   :  { %2250 = vmatprep.subr.mxu1 %v2471_v56 }
0x19f0   :  { %2251 = vmatpush3.msra.mxu1 %v2799_v31 }
0x19f1   :  { %2252 = vmatprep.subr.mxu1 %v2471_v56 }
0x19f2   :  { %2253 = vmatpush3.msra.mxu1 %v2807_v32 }
0x19f3   :  { %2254 = vmatprep.subr.mxu1 %v2471_v56 }
0x19f4   :  { %2255 = vmatpush3.msra.mxu1 %v2814_v33 }
0x1aa5   :  { %v1602_v2 = vpop.f32.mrf.mxu1 }
0x1aa6   :  { %v1603_v4 = vadd.f32 %v2823_v34, %v1602_v2 }
0x1aa7   :  { %v2214_v3 = vpop.f32.mrf.mxu1 }
0x1aa8   :  { %v1606_v5 = vmax.f32 %v1603_v4, 0.0 }
0x1aaa   :  { %2224 = vmatmul.mubr.msk.f32.vlgmr.msra.gmra.mxu0 %vm444_vm3, %v1606_v5 }
0x1aab   :  { %2238 = vmatpush3.msra.mxu0 %v2746_v58  ;;  %2245 = vmatprep.mubr.msk.f32.mxu0 %vm2472_vm2, %v2471_v56 }
0x1aac   :  { %2239 = vmatprep.subr.mxu0 %v2471_v56 }
0x1aad   :  { %v1755_v6 = vpop.f32.mrf.mxu1  ;;  %2240 = vmatpush3.msra.mxu0 %v2751_v24 }
0x1aae   :  { %v1756_v7 = vadd.f32 %v2739_v15, %v1755_v6  ;;  %2241 = vmatprep.subr.mxu0 %v2471_v56 }
0x1aaf   :  { %v2236_v8 = vpop.f32.mrf.mxu1  ;;  %2242 = vmatpush3.msra.mxu0 %v2758_v25 }
0x1ab0   :  { %2350 = vtanh.f32 %v1756_v7  ;;  %2243 = vmatprep.subr.mxu0 %v2471_v56  ;;  %v1984_v10 = vmul.f32 -1.442695, %v1756_v7 }
0x1ab1   :  { %2244 = vmatpush3.msra.mxu0 %v2765_v59 }
0x1ab2   :  { %2352 = vpow2.f32 %v1984_v10 }
0x1abd   :  { %v2351_v9 = vpop.eup %2350 }
0x1abe   :  { %1767 = vrot.lane.b32.xlu0 %v2351_v9, %s2470_s0 }
0x1abf   :  { %v2353_v11 = vpop.eup %2352 }
0x1ac0   :  { %v1762_v12 = vadd.f32 1.0, %v2353_v11 }
0x1ac2   :  { %2354 = vrcp.f32 %v1762_v12 }
0x1acf   :  { %v2355_v13 = vpop.eup %2354 }
0x1b30   :  { %v1768_v14 = vpop.permute.xlu0 %1767 }
0x1b31   :  { %v1770_v15 = vmul.f32 %v2355_v13, %v1768_v14 }
0x1b33   :  { %2356 = vtanh.f32 %v1770_v15 }
0x1b40   :  { %v2357_v16 = vpop.eup %2356 }
0x1b41   :  { %1773 = vrot.lane.b32.xlu1 %v2357_v16, %s2473_s4 }
0x1b6a   :  { %v1676_v17 = vpop.f32.mrf.mxu0 }
0x1b6b   :  { %v1677_v56 = vadd.f32 %v2843_v50, %v1676_v17 }
0x1b6c   :  { %v2225_v18 = vpop.f32.mrf.mxu0 }
0x1b6d   :  { %v1681_v19 = vrot.slane %v1677_v56, 1  ;;  %v1682_v55 = vrot.slane %v1677_v56, 2 }
0x1b6f   :  { %v1685_v20 = vadd.f32 %v1681_v19, %v1438_v61  ;;  %v1686_v21 = vadd.f32 %v1682_v55, %v1439_v62 }
0x1b71   :  { %1687 = vst.msk [vmem:[%s2926_s12 - $0x6] sm:$0x80] %vm1440_vm4, %v1685_v20  ;;  %1688 = vst.msk [vmem:[%s2926_s12 - $0x2] sm:$0x80] %vm1440_vm4, %v1686_v21 }
0x1bb3   :  { %v1774_v22 = vpop.permute.xlu1 %1773 }
0x1bb4   :  { %v1776_v57 = vmul.f32 %v2355_v13, %v1774_v22 }
0x1bb6   :  { %1778 = vrot.lane.b32.xlu0 %v1776_v57, %s2474_s21 }
0x1c28   :  { %v1779_v23 = vpop.permute.xlu0 %1778 }
0x1c29   :  { %2246 = vmatmul.mubr.msk.f32.vlgmr.msra.gmra.mxu0 %vm444_vm3, %v1779_v23 }
0x1ce9   :  { %v1848_v58 = vpop.f32.mrf.mxu0 }
0x1cea   :  { %v1849_v24 = vadd.f32 %v2823_v34, %v1848_v58 }
0x1ceb   :  { %v2247_v25 = vpop.f32.mrf.mxu0 }
0x1cec   :  { %v1852_v59 = vmax.f32 %v1849_v24, 0.0 }
0x1cee   :  { %2257 = vmatmul.mubr.msk.f32.vlgmr.msra.gmra.mxu1 %vm444_vm3, %v1852_v59 }
0x1dae   :  { %v1922_v26 = vpop.f32.mrf.mxu1 }
0x1daf   :  { %v1923_v27 = vadd.f32 %v2843_v50, %v1922_v26 }
0x1db0   :  { %v2258_v28 = vpop.f32.mrf.mxu1 }
0x1db1   :  { %v1927_v29 = vrot.slane %v1923_v27, 1  ;;  %v1928_v30 = vrot.slane %v1923_v27, 2 }
0x1db3   :  { %v1931_v31 = vadd.f32 %v1927_v29, %v1685_v20  ;;  %v1932_v32 = vadd.f32 %v1928_v30, %v1686_v21 }
0x1db5   :  { %1933 = vst.msk [vmem:[%s2926_s12 - $0x5] sm:$0x80] %vm1440_vm4, %v1931_v31  ;;  %1934 = vst.msk [vmem:[%s2926_s12 - $0x1] sm:$0x80] %vm1440_vm4, %v1932_v32 }
0x1db6   :  { %1939 = vsyncpa [#allocation4], 1 }
0x1db7   :  { %1940 = vsyncpa [#allocation6], 1 }
0x1db8   :  { %1941 = vsyncpa [#allocation9], 1 }

</bundles_post_ra>
